<compile_context>
chip_gen: v7x
topology: tpu7x:2x2x1
jax: 0.10.0
libtpu: 0.0.40
codegen_flags: <defaults>
</compile_context>

<pallas_src>
import functools

import jax
import jax.numpy as jnp
from jax import lax
from jax.experimental import pallas as pl
from jax.experimental.pallas import tpu as pltpu


def _round_up(a: int, b: int) -> int:
    return ((a + b - 1) // b) * b


def _cdiv(a: int, b: int) -> int:
    return (a + b - 1) // b


def _coulomb_kernel(xy_ref, o_ref, *, k: int, n_acc: int = 4):
    """xy_ref: (2, K, TS, 128) block (x/y plane, anchor, batch-rows, batch-lanes).
    o_ref:  (TS, 128) per-sample loss for this batch tile."""
    ts, lanes = o_ref.shape
    eps = 1e-6
    eps2 = eps * eps
    tiny = 1e-20  # keeps rsqrt finite on zero-padded / coincident lanes

    accs = [jnp.zeros((ts, lanes), jnp.float32) for _ in range(n_acc)]
    p = 0
    # Statically unrolled K*(K-1)/2 pairs; each pair is dense (TS,128) VPU work
    # plus a single EUP rsqrt push.
    for i in range(k):
        xi = xy_ref[0, i]  # (TS, 128)
        yi = xy_ref[1, i]
        for j in range(i + 1, k):
            dx = xi - xy_ref[0, j]
            dy = yi - xy_ref[1, j]
            d2 = dx * dx + dy * dy
            r = lax.rsqrt(jnp.maximum(d2, tiny))
            r2 = r * r
            # 1/(sqrt(d2)+eps) = r/(1+eps*r) ~= r - eps*r^2 + eps^2*r^3
            # (relative error ~(eps*r)^3, negligible for non-degenerate anchors).
            contrib = r - eps * r2 + eps2 * (r2 * r)
            accs[p] = accs[p] + contrib
            p = (p + 1) % n_acc

    total = accs[0]
    for a in accs[1:]:
        total = total + a
    o_ref[...] = total


def coulomb_loss(coords: jax.Array, reduction: str = "mean") -> jax.Array:
    """Pallas implementation of CoulombLoss.forward.

    coords: (N, K, 2) float array.
    Returns a scalar for reduction in {'mean','sum'}, or shape (N,) for 'none'.
    """
    coords = coords.astype(jnp.float32)
    n, k, two = coords.shape
    assert two == 2, "coords must have trailing dim 2 (x, y)"

    LANE = 128   # lane width
    SUB = 8      # sublane granularity for the (8,128) block constraint
    TS_MAX = 32  # max batch rows per tile -> up to 4096 samples / grid step

    n_rows = _cdiv(n, LANE)
    if n_rows <= SUB:
        # Small batch: one tile covering everything (block dim == full dim, so
        # the (8,128) constraint is satisfied even for ts not a multiple of 8).
        ts = n_rows
        num_tiles = 1
    else:
        # >= 2 tiles so both v7x TensorCores get work; ts a multiple of 8.
        num_tiles = max(_cdiv(n_rows, TS_MAX), 2)
        ts = _round_up(_cdiv(n_rows, num_tiles), SUB)
        num_tiles = _cdiv(n_rows, ts)
    n_rows_pad = ts * num_tiles
    n_pad = n_rows_pad * LANE

    # Single relayout: (N, K, 2) -> (2, K, N) -> pad batch -> (2, K, rows, 128).
    xy = jnp.transpose(coords, (2, 1, 0))
    if n_pad != n:
        # Zero-padded samples compute finite garbage and are sliced off below,
        # so they never contaminate mean/sum.
        xy = jnp.pad(xy, ((0, 0), (0, 0), (0, n_pad - n)))
    xy = xy.reshape(2, k, n_rows_pad, LANE)

    kernel = functools.partial(_coulomb_kernel, k=k)
    out = pl.pallas_call(
        kernel,
        out_shape=jax.ShapeDtypeStruct((n_rows_pad, LANE), jnp.float32),
        grid=(num_tiles,),
        in_specs=[pl.BlockSpec((2, k, ts, LANE), lambda i: (0, 0, i, 0))],
        out_specs=pl.BlockSpec((ts, LANE), lambda i: (i, 0)),
        compiler_params=pltpu.CompilerParams(
            dimension_semantics=("parallel",)),
    )(xy)

    per_batch = out.reshape(-1)[:n]  # drop padded samples
    if reduction == "mean":
        return jnp.mean(per_batch)
    if reduction == "sum":
        return jnp.sum(per_batch)
    return per_batch  # 'none'


def _reference(coords: jax.Array, reduction: str = "mean") -> jax.Array:
    """Pure-JAX reference mirroring the PyTorch loops."""
    coords = coords.astype(jnp.float32)
    _, k, _ = coords.shape
    loss = jnp.zeros((coords.shape[0],), jnp.float32)
    for i in range(k):
        for j in range(i + 1, k):
            dist = jnp.linalg.norm(coords[:, i] - coords[:, j], axis=1)
            loss = loss + 1.0 / (dist + 1e-6)
    if reduction == "mean":
        return loss.mean()
    if reduction == "sum":
        return loss.sum()
    return loss


if __name__ == "__main__":
    key = jax.random.PRNGKey(0)

    # Small test matching the module spec: batch=2, K=8 anchors, xy coords.
    N, K = 2, 8
    coords = jax.random.uniform(key, (N, K, 2), dtype=jnp.float32)

    out = jax.block_until_ready(coulomb_loss(coords, reduction="mean"))
    ref = _reference(coords, reduction="mean")
    assert jnp.allclose(out, ref, rtol=1e-5, atol=1e-5), (out, ref)

    out_sum = jax.block_until_ready(coulomb_loss(coords, reduction="sum"))
    out_none = jax.block_until_ready(coulomb_loss(coords, reduction="none"))
    assert jnp.allclose(out_sum, _reference(coords, "sum"), rtol=1e-5, atol=1e-5)
    assert jnp.allclose(out_none, _reference(coords, "none"), rtol=1e-5, atol=1e-5)

    # Medium batch: exercises single-tile dense (rows,128) layout + lane padding.
    key2 = jax.random.PRNGKey(1)
    coords_med = jax.random.uniform(key2, (600, 5, 2), dtype=jnp.float32)
    out_med = jax.block_until_ready(coulomb_loss(coords_med, reduction="mean"))
    ref_med = _reference(coords_med, reduction="mean")
    assert jnp.allclose(out_med, ref_med, rtol=1e-4, atol=1e-4), (out_med, ref_med)

    # Larger batch: exercises the multi-tile (>=2 grid steps) path with row padding.
    key3 = jax.random.PRNGKey(2)
    coords_big = jax.random.uniform(key3, (1200, 5, 2), dtype=jnp.float32)
    out_big = jax.block_until_ready(coulomb_loss(coords_big, reduction="mean"))
    ref_big = _reference(coords_big, reduction="mean")
    assert jnp.allclose(out_big, ref_big, rtol=1e-4, atol=1e-4), (out_big, ref_big)

    print("KERNEL_OK")
</pallas_src>

<mosaic_0001>
module attributes {stable_mosaic.version = 11 : i64} {
  func.func @_coulomb_kernel(%arg0: i32, %arg1: memref<2x8x1x128xf32, #tpu.memory_space<vmem>>, %arg2: memref<1x128xf32, #tpu.memory_space<vmem>>) attributes {dimension_semantics = [#tpu.dimension_semantics<parallel>], iteration_bounds = array<i64: 1>, scalar_prefetch = 0 : i64, scratch_operands = 0 : i64, tpu.core_type = #tpu.core_type<tc>, window_params = [{transform_indices = @transform_0, window_bounds = array<i64: 2, 8, 1, 128>}, {transform_indices = @transform_1, window_bounds = array<i64: 1, 128>}]} {
    %cst = arith.constant 0.000000e+00 : f32
    %0 = vector.broadcast %cst : f32 to vector<1x128xf32>
    %cst_0 = arith.constant 0.000000e+00 : f32
    %1 = vector.broadcast %cst_0 : f32 to vector<1x128xf32>
    %cst_1 = arith.constant 0.000000e+00 : f32
    %2 = vector.broadcast %cst_1 : f32 to vector<1x128xf32>
    %cst_2 = arith.constant 0.000000e+00 : f32
    %3 = vector.broadcast %cst_2 : f32 to vector<1x128xf32>
    %c0 = arith.constant 0 : index
    %c0_3 = arith.constant 0 : index
    %c0_4 = arith.constant 0 : index
    %c0_5 = arith.constant 0 : index
    %4 = vector.load %arg1[%c0, %c0_3, %c0_4, %c0_5] : memref<2x8x1x128xf32, #tpu.memory_space<vmem>>, vector<1x1x1x128xf32>
    %5 = vector.shape_cast %4 : vector<1x1x1x128xf32> to vector<1x128xf32>
    %c1 = arith.constant 1 : index
    %c0_6 = arith.constant 0 : index
    %c0_7 = arith.constant 0 : index
    %c0_8 = arith.constant 0 : index
    %6 = vector.load %arg1[%c1, %c0_6, %c0_7, %c0_8] : memref<2x8x1x128xf32, #tpu.memory_space<vmem>>, vector<1x1x1x128xf32>
    %7 = vector.shape_cast %6 : vector<1x1x1x128xf32> to vector<1x128xf32>
    %c0_9 = arith.constant 0 : index
    %c1_10 = arith.constant 1 : index
    %c0_11 = arith.constant 0 : index
    %c0_12 = arith.constant 0 : index
    %8 = vector.load %arg1[%c0_9, %c1_10, %c0_11, %c0_12] : memref<2x8x1x128xf32, #tpu.memory_space<vmem>>, vector<1x1x1x128xf32>
    %9 = vector.shape_cast %8 : vector<1x1x1x128xf32> to vector<1x128xf32>
    %10 = arith.subf %5, %9 : vector<1x128xf32>
    %c1_13 = arith.constant 1 : index
    %c1_14 = arith.constant 1 : index
    %c0_15 = arith.constant 0 : index
    %c0_16 = arith.constant 0 : index
    %11 = vector.load %arg1[%c1_13, %c1_14, %c0_15, %c0_16] : memref<2x8x1x128xf32, #tpu.memory_space<vmem>>, vector<1x1x1x128xf32>
    %12 = vector.shape_cast %11 : vector<1x1x1x128xf32> to vector<1x128xf32>
    %13 = arith.subf %7, %12 : vector<1x128xf32>
    %14 = arith.mulf %10, %10 : vector<1x128xf32>
    %15 = arith.mulf %13, %13 : vector<1x128xf32>
    %16 = arith.addf %14, %15 : vector<1x128xf32>
    %cst_17 = arith.constant 9.99999968E-21 : f32
    %17 = vector.broadcast %cst_17 : f32 to vector<1x128xf32>
    %18 = arith.maximumf %16, %17 : vector<1x128xf32>
    %19 = math.rsqrt %18 : vector<1x128xf32>
    %20 = arith.mulf %19, %19 : vector<1x128xf32>
    %cst_18 = arith.constant 9.99999997E-7 : f32
    %21 = vector.broadcast %cst_18 : f32 to vector<1x128xf32>
    %22 = arith.mulf %21, %20 : vector<1x128xf32>
    %23 = arith.subf %19, %22 : vector<1x128xf32>
    %24 = arith.mulf %20, %19 : vector<1x128xf32>
    %cst_19 = arith.constant 9.99999996E-13 : f32
    %25 = vector.broadcast %cst_19 : f32 to vector<1x128xf32>
    %26 = arith.mulf %25, %24 : vector<1x128xf32>
    %27 = arith.addf %23, %26 : vector<1x128xf32>
    %28 = arith.addf %0, %27 : vector<1x128xf32>
    %c0_20 = arith.constant 0 : index
    %c2 = arith.constant 2 : index
    %c0_21 = arith.constant 0 : index
    %c0_22 = arith.constant 0 : index
    %29 = vector.load %arg1[%c0_20, %c2, %c0_21, %c0_22] : memref<2x8x1x128xf32, #tpu.memory_space<vmem>>, vector<1x1x1x128xf32>
    %30 = vector.shape_cast %29 : vector<1x1x1x128xf32> to vector<1x128xf32>
    %31 = arith.subf %5, %30 : vector<1x128xf32>
    %c1_23 = arith.constant 1 : index
    %c2_24 = arith.constant 2 : index
    %c0_25 = arith.constant 0 : index
    %c0_26 = arith.constant 0 : index
    %32 = vector.load %arg1[%c1_23, %c2_24, %c0_25, %c0_26] : memref<2x8x1x128xf32, #tpu.memory_space<vmem>>, vector<1x1x1x128xf32>
    %33 = vector.shape_cast %32 : vector<1x1x1x128xf32> to vector<1x128xf32>
    %34 = arith.subf %7, %33 : vector<1x128xf32>
    %35 = arith.mulf %31, %31 : vector<1x128xf32>
    %36 = arith.mulf %34, %34 : vector<1x128xf32>
    %37 = arith.addf %35, %36 : vector<1x128xf32>
    %cst_27 = arith.constant 9.99999968E-21 : f32
    %38 = vector.broadcast %cst_27 : f32 to vector<1x128xf32>
    %39 = arith.maximumf %37, %38 : vector<1x128xf32>
    %40 = math.rsqrt %39 : vector<1x128xf32>
    %41 = arith.mulf %40, %40 : vector<1x128xf32>
    %cst_28 = arith.constant 9.99999997E-7 : f32
    %42 = vector.broadcast %cst_28 : f32 to vector<1x128xf32>
    %43 = arith.mulf %42, %41 : vector<1x128xf32>
    %44 = arith.subf %40, %43 : vector<1x128xf32>
    %45 = arith.mulf %41, %40 : vector<1x128xf32>
    %cst_29 = arith.constant 9.99999996E-13 : f32
    %46 = vector.broadcast %cst_29 : f32 to vector<1x128xf32>
    %47 = arith.mulf %46, %45 : vector<1x128xf32>
    %48 = arith.addf %44, %47 : vector<1x128xf32>
    %49 = arith.addf %1, %48 : vector<1x128xf32>
    %c0_30 = arith.constant 0 : index
    %c3 = arith.constant 3 : index
    %c0_31 = arith.constant 0 : index
    %c0_32 = arith.constant 0 : index
    %50 = vector.load %arg1[%c0_30, %c3, %c0_31, %c0_32] : memref<2x8x1x128xf32, #tpu.memory_space<vmem>>, vector<1x1x1x128xf32>
    %51 = vector.shape_cast %50 : vector<1x1x1x128xf32> to vector<1x128xf32>
    %52 = arith.subf %5, %51 : vector<1x128xf32>
    %c1_33 = arith.constant 1 : index
    %c3_34 = arith.constant 3 : index
    %c0_35 = arith.constant 0 : index
    %c0_36 = arith.constant 0 : index
    %53 = vector.load %arg1[%c1_33, %c3_34, %c0_35, %c0_36] : memref<2x8x1x128xf32, #tpu.memory_space<vmem>>, vector<1x1x1x128xf32>
    %54 = vector.shape_cast %53 : vector<1x1x1x128xf32> to vector<1x128xf32>
    %55 = arith.subf %7, %54 : vector<1x128xf32>
    %56 = arith.mulf %52, %52 : vector<1x128xf32>
    %57 = arith.mulf %55, %55 : vector<1x128xf32>
    %58 = arith.addf %56, %57 : vector<1x128xf32>
    %cst_37 = arith.constant 9.99999968E-21 : f32
    %59 = vector.broadcast %cst_37 : f32 to vector<1x128xf32>
    %60 = arith.maximumf %58, %59 : vector<1x128xf32>
    %61 = math.rsqrt %60 : vector<1x128xf32>
    %62 = arith.mulf %61, %61 : vector<1x128xf32>
    %cst_38 = arith.constant 9.99999997E-7 : f32
    %63 = vector.broadcast %cst_38 : f32 to vector<1x128xf32>
    %64 = arith.mulf %63, %62 : vector<1x128xf32>
    %65 = arith.subf %61, %64 : vector<1x128xf32>
    %66 = arith.mulf %62, %61 : vector<1x128xf32>
    %cst_39 = arith.constant 9.99999996E-13 : f32
    %67 = vector.broadcast %cst_39 : f32 to vector<1x128xf32>
    %68 = arith.mulf %67, %66 : vector<1x128xf32>
    %69 = arith.addf %65, %68 : vector<1x128xf32>
    %70 = arith.addf %2, %69 : vector<1x128xf32>
    %c0_40 = arith.constant 0 : index
    %c4 = arith.constant 4 : index
    %c0_41 = arith.constant 0 : index
    %c0_42 = arith.constant 0 : index
    %71 = vector.load %arg1[%c0_40, %c4, %c0_41, %c0_42] : memref<2x8x1x128xf32, #tpu.memory_space<vmem>>, vector<1x1x1x128xf32>
    %72 = vector.shape_cast %71 : vector<1x1x1x128xf32> to vector<1x128xf32>
    %73 = arith.subf %5, %72 : vector<1x128xf32>
    %c1_43 = arith.constant 1 : index
    %c4_44 = arith.constant 4 : index
    %c0_45 = arith.constant 0 : index
    %c0_46 = arith.constant 0 : index
    %74 = vector.load %arg1[%c1_43, %c4_44, %c0_45, %c0_46] : memref<2x8x1x128xf32, #tpu.memory_space<vmem>>, vector<1x1x1x128xf32>
    %75 = vector.shape_cast %74 : vector<1x1x1x128xf32> to vector<1x128xf32>
    %76 = arith.subf %7, %75 : vector<1x128xf32>
    %77 = arith.mulf %73, %73 : vector<1x128xf32>
    %78 = arith.mulf %76, %76 : vector<1x128xf32>
    %79 = arith.addf %77, %78 : vector<1x128xf32>
    %cst_47 = arith.constant 9.99999968E-21 : f32
    %80 = vector.broadcast %cst_47 : f32 to vector<1x128xf32>
    %81 = arith.maximumf %79, %80 : vector<1x128xf32>
    %82 = math.rsqrt %81 : vector<1x128xf32>
    %83 = arith.mulf %82, %82 : vector<1x128xf32>
    %cst_48 = arith.constant 9.99999997E-7 : f32
    %84 = vector.broadcast %cst_48 : f32 to vector<1x128xf32>
    %85 = arith.mulf %84, %83 : vector<1x128xf32>
    %86 = arith.subf %82, %85 : vector<1x128xf32>
    %87 = arith.mulf %83, %82 : vector<1x128xf32>
    %cst_49 = arith.constant 9.99999996E-13 : f32
    %88 = vector.broadcast %cst_49 : f32 to vector<1x128xf32>
    %89 = arith.mulf %88, %87 : vector<1x128xf32>
    %90 = arith.addf %86, %89 : vector<1x128xf32>
    %91 = arith.addf %3, %90 : vector<1x128xf32>
    %c0_50 = arith.constant 0 : index
    %c5 = arith.constant 5 : index
    %c0_51 = arith.constant 0 : index
    %c0_52 = arith.constant 0 : index
    %92 = vector.load %arg1[%c0_50, %c5, %c0_51, %c0_52] : memref<2x8x1x128xf32, #tpu.memory_space<vmem>>, vector<1x1x1x128xf32>
    %93 = vector.shape_cast %92 : vector<1x1x1x128xf32> to vector<1x128xf32>
    %94 = arith.subf %5, %93 : vector<1x128xf32>
    %c1_53 = arith.constant 1 : index
    %c5_54 = arith.constant 5 : index
    %c0_55 = arith.constant 0 : index
    %c0_56 = arith.constant 0 : index
    %95 = vector.load %arg1[%c1_53, %c5_54, %c0_55, %c0_56] : memref<2x8x1x128xf32, #tpu.memory_space<vmem>>, vector<1x1x1x128xf32>
    %96 = vector.shape_cast %95 : vector<1x1x1x128xf32> to vector<1x128xf32>
    %97 = arith.subf %7, %96 : vector<1x128xf32>
    %98 = arith.mulf %94, %94 : vector<1x128xf32>
    %99 = arith.mulf %97, %97 : vector<1x128xf32>
    %100 = arith.addf %98, %99 : vector<1x128xf32>
    %cst_57 = arith.constant 9.99999968E-21 : f32
    %101 = vector.broadcast %cst_57 : f32 to vector<1x128xf32>
    %102 = arith.maximumf %100, %101 : vector<1x128xf32>
    %103 = math.rsqrt %102 : vector<1x128xf32>
    %104 = arith.mulf %103, %103 : vector<1x128xf32>
    %cst_58 = arith.constant 9.99999997E-7 : f32
    %105 = vector.broadcast %cst_58 : f32 to vector<1x128xf32>
    %106 = arith.mulf %105, %104 : vector<1x128xf32>
    %107 = arith.subf %103, %106 : vector<1x128xf32>
    %108 = arith.mulf %104, %103 : vector<1x128xf32>
    %cst_59 = arith.constant 9.99999996E-13 : f32
    %109 = vector.broadcast %cst_59 : f32 to vector<1x128xf32>
    %110 = arith.mulf %109, %108 : vector<1x128xf32>
    %111 = arith.addf %107, %110 : vector<1x128xf32>
    %112 = arith.addf %28, %111 : vector<1x128xf32>
    %c0_60 = arith.constant 0 : index
    %c6 = arith.constant 6 : index
    %c0_61 = arith.constant 0 : index
    %c0_62 = arith.constant 0 : index
    %113 = vector.load %arg1[%c0_60, %c6, %c0_61, %c0_62] : memref<2x8x1x128xf32, #tpu.memory_space<vmem>>, vector<1x1x1x128xf32>
    %114 = vector.shape_cast %113 : vector<1x1x1x128xf32> to vector<1x128xf32>
    %115 = arith.subf %5, %114 : vector<1x128xf32>
    %c1_63 = arith.constant 1 : index
    %c6_64 = arith.constant 6 : index
    %c0_65 = arith.constant 0 : index
    %c0_66 = arith.constant 0 : index
    %116 = vector.load %arg1[%c1_63, %c6_64, %c0_65, %c0_66] : memref<2x8x1x128xf32, #tpu.memory_space<vmem>>, vector<1x1x1x128xf32>
    %117 = vector.shape_cast %116 : vector<1x1x1x128xf32> to vector<1x128xf32>
    %118 = arith.subf %7, %117 : vector<1x128xf32>
    %119 = arith.mulf %115, %115 : vector<1x128xf32>
    %120 = arith.mulf %118, %118 : vector<1x128xf32>
    %121 = arith.addf %119, %120 : vector<1x128xf32>
    %cst_67 = arith.constant 9.99999968E-21 : f32
    %122 = vector.broadcast %cst_67 : f32 to vector<1x128xf32>
    %123 = arith.maximumf %121, %122 : vector<1x128xf32>
    %124 = math.rsqrt %123 : vector<1x128xf32>
    %125 = arith.mulf %124, %124 : vector<1x128xf32>
    %cst_68 = arith.constant 9.99999997E-7 : f32
    %126 = vector.broadcast %cst_68 : f32 to vector<1x128xf32>
    %127 = arith.mulf %126, %125 : vector<1x128xf32>
    %128 = arith.subf %124, %127 : vector<1x128xf32>
    %129 = arith.mulf %125, %124 : vector<1x128xf32>
    %cst_69 = arith.constant 9.99999996E-13 : f32
    %130 = vector.broadcast %cst_69 : f32 to vector<1x128xf32>
    %131 = arith.mulf %130, %129 : vector<1x128xf32>
    %132 = arith.addf %128, %131 : vector<1x128xf32>
    %133 = arith.addf %49, %132 : vector<1x128xf32>
    %c0_70 = arith.constant 0 : index
    %c7 = arith.constant 7 : index
    %c0_71 = arith.constant 0 : index
    %c0_72 = arith.constant 0 : index
    %134 = vector.load %arg1[%c0_70, %c7, %c0_71, %c0_72] : memref<2x8x1x128xf32, #tpu.memory_space<vmem>>, vector<1x1x1x128xf32>
    %135 = vector.shape_cast %134 : vector<1x1x1x128xf32> to vector<1x128xf32>
    %136 = arith.subf %5, %135 : vector<1x128xf32>
    %c1_73 = arith.constant 1 : index
    %c7_74 = arith.constant 7 : index
    %c0_75 = arith.constant 0 : index
    %c0_76 = arith.constant 0 : index
    %137 = vector.load %arg1[%c1_73, %c7_74, %c0_75, %c0_76] : memref<2x8x1x128xf32, #tpu.memory_space<vmem>>, vector<1x1x1x128xf32>
    %138 = vector.shape_cast %137 : vector<1x1x1x128xf32> to vector<1x128xf32>
    %139 = arith.subf %7, %138 : vector<1x128xf32>
    %140 = arith.mulf %136, %136 : vector<1x128xf32>
    %141 = arith.mulf %139, %139 : vector<1x128xf32>
    %142 = arith.addf %140, %141 : vector<1x128xf32>
    %cst_77 = arith.constant 9.99999968E-21 : f32
    %143 = vector.broadcast %cst_77 : f32 to vector<1x128xf32>
    %144 = arith.maximumf %142, %143 : vector<1x128xf32>
    %145 = math.rsqrt %144 : vector<1x128xf32>
    %146 = arith.mulf %145, %145 : vector<1x128xf32>
    %cst_78 = arith.constant 9.99999997E-7 : f32
    %147 = vector.broadcast %cst_78 : f32 to vector<1x128xf32>
    %148 = arith.mulf %147, %146 : vector<1x128xf32>
    %149 = arith.subf %145, %148 : vector<1x128xf32>
    %150 = arith.mulf %146, %145 : vector<1x128xf32>
    %cst_79 = arith.constant 9.99999996E-13 : f32
    %151 = vector.broadcast %cst_79 : f32 to vector<1x128xf32>
    %152 = arith.mulf %151, %150 : vector<1x128xf32>
    %153 = arith.addf %149, %152 : vector<1x128xf32>
    %154 = arith.addf %70, %153 : vector<1x128xf32>
    %c0_80 = arith.constant 0 : index
    %c1_81 = arith.constant 1 : index
    %c0_82 = arith.constant 0 : index
    %c0_83 = arith.constant 0 : index
    %155 = vector.load %arg1[%c0_80, %c1_81, %c0_82, %c0_83] : memref<2x8x1x128xf32, #tpu.memory_space<vmem>>, vector<1x1x1x128xf32>
    %156 = vector.shape_cast %155 : vector<1x1x1x128xf32> to vector<1x128xf32>
    %c1_84 = arith.constant 1 : index
    %c1_85 = arith.constant 1 : index
    %c0_86 = arith.constant 0 : index
    %c0_87 = arith.constant 0 : index
    %157 = vector.load %arg1[%c1_84, %c1_85, %c0_86, %c0_87] : memref<2x8x1x128xf32, #tpu.memory_space<vmem>>, vector<1x1x1x128xf32>
    %158 = vector.shape_cast %157 : vector<1x1x1x128xf32> to vector<1x128xf32>
    %c0_88 = arith.constant 0 : index
    %c2_89 = arith.constant 2 : index
    %c0_90 = arith.constant 0 : index
    %c0_91 = arith.constant 0 : index
    %159 = vector.load %arg1[%c0_88, %c2_89, %c0_90, %c0_91] : memref<2x8x1x128xf32, #tpu.memory_space<vmem>>, vector<1x1x1x128xf32>
    %160 = vector.shape_cast %159 : vector<1x1x1x128xf32> to vector<1x128xf32>
    %161 = arith.subf %156, %160 : vector<1x128xf32>
    %c1_92 = arith.constant 1 : index
    %c2_93 = arith.constant 2 : index
    %c0_94 = arith.constant 0 : index
    %c0_95 = arith.constant 0 : index
    %162 = vector.load %arg1[%c1_92, %c2_93, %c0_94, %c0_95] : memref<2x8x1x128xf32, #tpu.memory_space<vmem>>, vector<1x1x1x128xf32>
    %163 = vector.shape_cast %162 : vector<1x1x1x128xf32> to vector<1x128xf32>
    %164 = arith.subf %158, %163 : vector<1x128xf32>
    %165 = arith.mulf %161, %161 : vector<1x128xf32>
    %166 = arith.mulf %164, %164 : vector<1x128xf32>
    %167 = arith.addf %165, %166 : vector<1x128xf32>
    %cst_96 = arith.constant 9.99999968E-21 : f32
    %168 = vector.broadcast %cst_96 : f32 to vector<1x128xf32>
    %169 = arith.maximumf %167, %168 : vector<1x128xf32>
    %170 = math.rsqrt %169 : vector<1x128xf32>
    %171 = arith.mulf %170, %170 : vector<1x128xf32>
    %cst_97 = arith.constant 9.99999997E-7 : f32
    %172 = vector.broadcast %cst_97 : f32 to vector<1x128xf32>
    %173 = arith.mulf %172, %171 : vector<1x128xf32>
    %174 = arith.subf %170, %173 : vector<1x128xf32>
    %175 = arith.mulf %171, %170 : vector<1x128xf32>
    %cst_98 = arith.constant 9.99999996E-13 : f32
    %176 = vector.broadcast %cst_98 : f32 to vector<1x128xf32>
    %177 = arith.mulf %176, %175 : vector<1x128xf32>
    %178 = arith.addf %174, %177 : vector<1x128xf32>
    %179 = arith.addf %91, %178 : vector<1x128xf32>
    %c0_99 = arith.constant 0 : index
    %c3_100 = arith.constant 3 : index
    %c0_101 = arith.constant 0 : index
    %c0_102 = arith.constant 0 : index
    %180 = vector.load %arg1[%c0_99, %c3_100, %c0_101, %c0_102] : memref<2x8x1x128xf32, #tpu.memory_space<vmem>>, vector<1x1x1x128xf32>
    %181 = vector.shape_cast %180 : vector<1x1x1x128xf32> to vector<1x128xf32>
    %182 = arith.subf %156, %181 : vector<1x128xf32>
    %c1_103 = arith.constant 1 : index
    %c3_104 = arith.constant 3 : index
    %c0_105 = arith.constant 0 : index
    %c0_106 = arith.constant 0 : index
    %183 = vector.load %arg1[%c1_103, %c3_104, %c0_105, %c0_106] : memref<2x8x1x128xf32, #tpu.memory_space<vmem>>, vector<1x1x1x128xf32>
    %184 = vector.shape_cast %183 : vector<1x1x1x128xf32> to vector<1x128xf32>
    %185 = arith.subf %158, %184 : vector<1x128xf32>
    %186 = arith.mulf %182, %182 : vector<1x128xf32>
    %187 = arith.mulf %185, %185 : vector<1x128xf32>
    %188 = arith.addf %186, %187 : vector<1x128xf32>
    %cst_107 = arith.constant 9.99999968E-21 : f32
    %189 = vector.broadcast %cst_107 : f32 to vector<1x128xf32>
    %190 = arith.maximumf %188, %189 : vector<1x128xf32>
    %191 = math.rsqrt %190 : vector<1x128xf32>
    %192 = arith.mulf %191, %191 : vector<1x128xf32>
    %cst_108 = arith.constant 9.99999997E-7 : f32
    %193 = vector.broadcast %cst_108 : f32 to vector<1x128xf32>
    %194 = arith.mulf %193, %192 : vector<1x128xf32>
    %195 = arith.subf %191, %194 : vector<1x128xf32>
    %196 = arith.mulf %192, %191 : vector<1x128xf32>
    %cst_109 = arith.constant 9.99999996E-13 : f32
    %197 = vector.broadcast %cst_109 : f32 to vector<1x128xf32>
    %198 = arith.mulf %197, %196 : vector<1x128xf32>
    %199 = arith.addf %195, %198 : vector<1x128xf32>
    %200 = arith.addf %112, %199 : vector<1x128xf32>
    %c0_110 = arith.constant 0 : index
    %c4_111 = arith.constant 4 : index
    %c0_112 = arith.constant 0 : index
    %c0_113 = arith.constant 0 : index
    %201 = vector.load %arg1[%c0_110, %c4_111, %c0_112, %c0_113] : memref<2x8x1x128xf32, #tpu.memory_space<vmem>>, vector<1x1x1x128xf32>
    %202 = vector.shape_cast %201 : vector<1x1x1x128xf32> to vector<1x128xf32>
    %203 = arith.subf %156, %202 : vector<1x128xf32>
    %c1_114 = arith.constant 1 : index
    %c4_115 = arith.constant 4 : index
    %c0_116 = arith.constant 0 : index
    %c0_117 = arith.constant 0 : index
    %204 = vector.load %arg1[%c1_114, %c4_115, %c0_116, %c0_117] : memref<2x8x1x128xf32, #tpu.memory_space<vmem>>, vector<1x1x1x128xf32>
    %205 = vector.shape_cast %204 : vector<1x1x1x128xf32> to vector<1x128xf32>
    %206 = arith.subf %158, %205 : vector<1x128xf32>
    %207 = arith.mulf %203, %203 : vector<1x128xf32>
    %208 = arith.mulf %206, %206 : vector<1x128xf32>
    %209 = arith.addf %207, %208 : vector<1x128xf32>
    %cst_118 = arith.constant 9.99999968E-21 : f32
    %210 = vector.broadcast %cst_118 : f32 to vector<1x128xf32>
    %211 = arith.maximumf %209, %210 : vector<1x128xf32>
    %212 = math.rsqrt %211 : vector<1x128xf32>
    %213 = arith.mulf %212, %212 : vector<1x128xf32>
    %cst_119 = arith.constant 9.99999997E-7 : f32
    %214 = vector.broadcast %cst_119 : f32 to vector<1x128xf32>
    %215 = arith.mulf %214, %213 : vector<1x128xf32>
    %216 = arith.subf %212, %215 : vector<1x128xf32>
    %217 = arith.mulf %213, %212 : vector<1x128xf32>
    %cst_120 = arith.constant 9.99999996E-13 : f32
    %218 = vector.broadcast %cst_120 : f32 to vector<1x128xf32>
    %219 = arith.mulf %218, %217 : vector<1x128xf32>
    %220 = arith.addf %216, %219 : vector<1x128xf32>
    %221 = arith.addf %133, %220 : vector<1x128xf32>
    %c0_121 = arith.constant 0 : index
    %c5_122 = arith.constant 5 : index
    %c0_123 = arith.constant 0 : index
    %c0_124 = arith.constant 0 : index
    %222 = vector.load %arg1[%c0_121, %c5_122, %c0_123, %c0_124] : memref<2x8x1x128xf32, #tpu.memory_space<vmem>>, vector<1x1x1x128xf32>
    %223 = vector.shape_cast %222 : vector<1x1x1x128xf32> to vector<1x128xf32>
    %224 = arith.subf %156, %223 : vector<1x128xf32>
    %c1_125 = arith.constant 1 : index
    %c5_126 = arith.constant 5 : index
    %c0_127 = arith.constant 0 : index
    %c0_128 = arith.constant 0 : index
    %225 = vector.load %arg1[%c1_125, %c5_126, %c0_127, %c0_128] : memref<2x8x1x128xf32, #tpu.memory_space<vmem>>, vector<1x1x1x128xf32>
    %226 = vector.shape_cast %225 : vector<1x1x1x128xf32> to vector<1x128xf32>
    %227 = arith.subf %158, %226 : vector<1x128xf32>
    %228 = arith.mulf %224, %224 : vector<1x128xf32>
    %229 = arith.mulf %227, %227 : vector<1x128xf32>
    %230 = arith.addf %228, %229 : vector<1x128xf32>
    %cst_129 = arith.constant 9.99999968E-21 : f32
    %231 = vector.broadcast %cst_129 : f32 to vector<1x128xf32>
    %232 = arith.maximumf %230, %231 : vector<1x128xf32>
    %233 = math.rsqrt %232 : vector<1x128xf32>
    %234 = arith.mulf %233, %233 : vector<1x128xf32>
    %cst_130 = arith.constant 9.99999997E-7 : f32
    %235 = vector.broadcast %cst_130 : f32 to vector<1x128xf32>
    %236 = arith.mulf %235, %234 : vector<1x128xf32>
    %237 = arith.subf %233, %236 : vector<1x128xf32>
    %238 = arith.mulf %234, %233 : vector<1x128xf32>
    %cst_131 = arith.constant 9.99999996E-13 : f32
    %239 = vector.broadcast %cst_131 : f32 to vector<1x128xf32>
    %240 = arith.mulf %239, %238 : vector<1x128xf32>
    %241 = arith.addf %237, %240 : vector<1x128xf32>
    %242 = arith.addf %154, %241 : vector<1x128xf32>
    %c0_132 = arith.constant 0 : index
    %c6_133 = arith.constant 6 : index
    %c0_134 = arith.constant 0 : index
    %c0_135 = arith.constant 0 : index
    %243 = vector.load %arg1[%c0_132, %c6_133, %c0_134, %c0_135] : memref<2x8x1x128xf32, #tpu.memory_space<vmem>>, vector<1x1x1x128xf32>
    %244 = vector.shape_cast %243 : vector<1x1x1x128xf32> to vector<1x128xf32>
    %245 = arith.subf %156, %244 : vector<1x128xf32>
    %c1_136 = arith.constant 1 : index
    %c6_137 = arith.constant 6 : index
    %c0_138 = arith.constant 0 : index
    %c0_139 = arith.constant 0 : index
    %246 = vector.load %arg1[%c1_136, %c6_137, %c0_138, %c0_139] : memref<2x8x1x128xf32, #tpu.memory_space<vmem>>, vector<1x1x1x128xf32>
    %247 = vector.shape_cast %246 : vector<1x1x1x128xf32> to vector<1x128xf32>
    %248 = arith.subf %158, %247 : vector<1x128xf32>
    %249 = arith.mulf %245, %245 : vector<1x128xf32>
    %250 = arith.mulf %248, %248 : vector<1x128xf32>
    %251 = arith.addf %249, %250 : vector<1x128xf32>
    %cst_140 = arith.constant 9.99999968E-21 : f32
    %252 = vector.broadcast %cst_140 : f32 to vector<1x128xf32>
    %253 = arith.maximumf %251, %252 : vector<1x128xf32>
    %254 = math.rsqrt %253 : vector<1x128xf32>
    %255 = arith.mulf %254, %254 : vector<1x128xf32>
    %cst_141 = arith.constant 9.99999997E-7 : f32
    %256 = vector.broadcast %cst_141 : f32 to vector<1x128xf32>
    %257 = arith.mulf %256, %255 : vector<1x128xf32>
    %258 = arith.subf %254, %257 : vector<1x128xf32>
    %259 = arith.mulf %255, %254 : vector<1x128xf32>
    %cst_142 = arith.constant 9.99999996E-13 : f32
    %260 = vector.broadcast %cst_142 : f32 to vector<1x128xf32>
    %261 = arith.mulf %260, %259 : vector<1x128xf32>
    %262 = arith.addf %258, %261 : vector<1x128xf32>
    %263 = arith.addf %179, %262 : vector<1x128xf32>
    %c0_143 = arith.constant 0 : index
    %c7_144 = arith.constant 7 : index
    %c0_145 = arith.constant 0 : index
    %c0_146 = arith.constant 0 : index
    %264 = vector.load %arg1[%c0_143, %c7_144, %c0_145, %c0_146] : memref<2x8x1x128xf32, #tpu.memory_space<vmem>>, vector<1x1x1x128xf32>
    %265 = vector.shape_cast %264 : vector<1x1x1x128xf32> to vector<1x128xf32>
    %266 = arith.subf %156, %265 : vector<1x128xf32>
    %c1_147 = arith.constant 1 : index
    %c7_148 = arith.constant 7 : index
    %c0_149 = arith.constant 0 : index
    %c0_150 = arith.constant 0 : index
    %267 = vector.load %arg1[%c1_147, %c7_148, %c0_149, %c0_150] : memref<2x8x1x128xf32, #tpu.memory_space<vmem>>, vector<1x1x1x128xf32>
    %268 = vector.shape_cast %267 : vector<1x1x1x128xf32> to vector<1x128xf32>
    %269 = arith.subf %158, %268 : vector<1x128xf32>
    %270 = arith.mulf %266, %266 : vector<1x128xf32>
    %271 = arith.mulf %269, %269 : vector<1x128xf32>
    %272 = arith.addf %270, %271 : vector<1x128xf32>
    %cst_151 = arith.constant 9.99999968E-21 : f32
    %273 = vector.broadcast %cst_151 : f32 to vector<1x128xf32>
    %274 = arith.maximumf %272, %273 : vector<1x128xf32>
    %275 = math.rsqrt %274 : vector<1x128xf32>
    %276 = arith.mulf %275, %275 : vector<1x128xf32>
    %cst_152 = arith.constant 9.99999997E-7 : f32
    %277 = vector.broadcast %cst_152 : f32 to vector<1x128xf32>
    %278 = arith.mulf %277, %276 : vector<1x128xf32>
    %279 = arith.subf %275, %278 : vector<1x128xf32>
    %280 = arith.mulf %276, %275 : vector<1x128xf32>
    %cst_153 = arith.constant 9.99999996E-13 : f32
    %281 = vector.broadcast %cst_153 : f32 to vector<1x128xf32>
    %282 = arith.mulf %281, %280 : vector<1x128xf32>
    %283 = arith.addf %279, %282 : vector<1x128xf32>
    %284 = arith.addf %200, %283 : vector<1x128xf32>
    %c0_154 = arith.constant 0 : index
    %c2_155 = arith.constant 2 : index
    %c0_156 = arith.constant 0 : index
    %c0_157 = arith.constant 0 : index
    %285 = vector.load %arg1[%c0_154, %c2_155, %c0_156, %c0_157] : memref<2x8x1x128xf32, #tpu.memory_space<vmem>>, vector<1x1x1x128xf32>
    %286 = vector.shape_cast %285 : vector<1x1x1x128xf32> to vector<1x128xf32>
    %c1_158 = arith.constant 1 : index
    %c2_159 = arith.constant 2 : index
    %c0_160 = arith.constant 0 : index
    %c0_161 = arith.constant 0 : index
    %287 = vector.load %arg1[%c1_158, %c2_159, %c0_160, %c0_161] : memref<2x8x1x128xf32, #tpu.memory_space<vmem>>, vector<1x1x1x128xf32>
    %288 = vector.shape_cast %287 : vector<1x1x1x128xf32> to vector<1x128xf32>
    %c0_162 = arith.constant 0 : index
    %c3_163 = arith.constant 3 : index
    %c0_164 = arith.constant 0 : index
    %c0_165 = arith.constant 0 : index
    %289 = vector.load %arg1[%c0_162, %c3_163, %c0_164, %c0_165] : memref<2x8x1x128xf32, #tpu.memory_space<vmem>>, vector<1x1x1x128xf32>
    %290 = vector.shape_cast %289 : vector<1x1x1x128xf32> to vector<1x128xf32>
    %291 = arith.subf %286, %290 : vector<1x128xf32>
    %c1_166 = arith.constant 1 : index
    %c3_167 = arith.constant 3 : index
    %c0_168 = arith.constant 0 : index
    %c0_169 = arith.constant 0 : index
    %292 = vector.load %arg1[%c1_166, %c3_167, %c0_168, %c0_169] : memref<2x8x1x128xf32, #tpu.memory_space<vmem>>, vector<1x1x1x128xf32>
    %293 = vector.shape_cast %292 : vector<1x1x1x128xf32> to vector<1x128xf32>
    %294 = arith.subf %288, %293 : vector<1x128xf32>
    %295 = arith.mulf %291, %291 : vector<1x128xf32>
    %296 = arith.mulf %294, %294 : vector<1x128xf32>
    %297 = arith.addf %295, %296 : vector<1x128xf32>
    %cst_170 = arith.constant 9.99999968E-21 : f32
    %298 = vector.broadcast %cst_170 : f32 to vector<1x128xf32>
    %299 = arith.maximumf %297, %298 : vector<1x128xf32>
    %300 = math.rsqrt %299 : vector<1x128xf32>
    %301 = arith.mulf %300, %300 : vector<1x128xf32>
    %cst_171 = arith.constant 9.99999997E-7 : f32
    %302 = vector.broadcast %cst_171 : f32 to vector<1x128xf32>
    %303 = arith.mulf %302, %301 : vector<1x128xf32>
    %304 = arith.subf %300, %303 : vector<1x128xf32>
    %305 = arith.mulf %301, %300 : vector<1x128xf32>
    %cst_172 = arith.constant 9.99999996E-13 : f32
    %306 = vector.broadcast %cst_172 : f32 to vector<1x128xf32>
    %307 = arith.mulf %306, %305 : vector<1x128xf32>
    %308 = arith.addf %304, %307 : vector<1x128xf32>
    %309 = arith.addf %221, %308 : vector<1x128xf32>
    %c0_173 = arith.constant 0 : index
    %c4_174 = arith.constant 4 : index
    %c0_175 = arith.constant 0 : index
    %c0_176 = arith.constant 0 : index
    %310 = vector.load %arg1[%c0_173, %c4_174, %c0_175, %c0_176] : memref<2x8x1x128xf32, #tpu.memory_space<vmem>>, vector<1x1x1x128xf32>
    %311 = vector.shape_cast %310 : vector<1x1x1x128xf32> to vector<1x128xf32>
    %312 = arith.subf %286, %311 : vector<1x128xf32>
    %c1_177 = arith.constant 1 : index
    %c4_178 = arith.constant 4 : index
    %c0_179 = arith.constant 0 : index
    %c0_180 = arith.constant 0 : index
    %313 = vector.load %arg1[%c1_177, %c4_178, %c0_179, %c0_180] : memref<2x8x1x128xf32, #tpu.memory_space<vmem>>, vector<1x1x1x128xf32>
    %314 = vector.shape_cast %313 : vector<1x1x1x128xf32> to vector<1x128xf32>
    %315 = arith.subf %288, %314 : vector<1x128xf32>
    %316 = arith.mulf %312, %312 : vector<1x128xf32>
    %317 = arith.mulf %315, %315 : vector<1x128xf32>
    %318 = arith.addf %316, %317 : vector<1x128xf32>
    %cst_181 = arith.constant 9.99999968E-21 : f32
    %319 = vector.broadcast %cst_181 : f32 to vector<1x128xf32>
    %320 = arith.maximumf %318, %319 : vector<1x128xf32>
    %321 = math.rsqrt %320 : vector<1x128xf32>
    %322 = arith.mulf %321, %321 : vector<1x128xf32>
    %cst_182 = arith.constant 9.99999997E-7 : f32
    %323 = vector.broadcast %cst_182 : f32 to vector<1x128xf32>
    %324 = arith.mulf %323, %322 : vector<1x128xf32>
    %325 = arith.subf %321, %324 : vector<1x128xf32>
    %326 = arith.mulf %322, %321 : vector<1x128xf32>
    %cst_183 = arith.constant 9.99999996E-13 : f32
    %327 = vector.broadcast %cst_183 : f32 to vector<1x128xf32>
    %328 = arith.mulf %327, %326 : vector<1x128xf32>
    %329 = arith.addf %325, %328 : vector<1x128xf32>
    %330 = arith.addf %242, %329 : vector<1x128xf32>
    %c0_184 = arith.constant 0 : index
    %c5_185 = arith.constant 5 : index
    %c0_186 = arith.constant 0 : index
    %c0_187 = arith.constant 0 : index
    %331 = vector.load %arg1[%c0_184, %c5_185, %c0_186, %c0_187] : memref<2x8x1x128xf32, #tpu.memory_space<vmem>>, vector<1x1x1x128xf32>
    %332 = vector.shape_cast %331 : vector<1x1x1x128xf32> to vector<1x128xf32>
    %333 = arith.subf %286, %332 : vector<1x128xf32>
    %c1_188 = arith.constant 1 : index
    %c5_189 = arith.constant 5 : index
    %c0_190 = arith.constant 0 : index
    %c0_191 = arith.constant 0 : index
    %334 = vector.load %arg1[%c1_188, %c5_189, %c0_190, %c0_191] : memref<2x8x1x128xf32, #tpu.memory_space<vmem>>, vector<1x1x1x128xf32>
    %335 = vector.shape_cast %334 : vector<1x1x1x128xf32> to vector<1x128xf32>
    %336 = arith.subf %288, %335 : vector<1x128xf32>
    %337 = arith.mulf %333, %333 : vector<1x128xf32>
    %338 = arith.mulf %336, %336 : vector<1x128xf32>
    %339 = arith.addf %337, %338 : vector<1x128xf32>
    %cst_192 = arith.constant 9.99999968E-21 : f32
    %340 = vector.broadcast %cst_192 : f32 to vector<1x128xf32>
    %341 = arith.maximumf %339, %340 : vector<1x128xf32>
    %342 = math.rsqrt %341 : vector<1x128xf32>
    %343 = arith.mulf %342, %342 : vector<1x128xf32>
    %cst_193 = arith.constant 9.99999997E-7 : f32
    %344 = vector.broadcast %cst_193 : f32 to vector<1x128xf32>
    %345 = arith.mulf %344, %343 : vector<1x128xf32>
    %346 = arith.subf %342, %345 : vector<1x128xf32>
    %347 = arith.mulf %343, %342 : vector<1x128xf32>
    %cst_194 = arith.constant 9.99999996E-13 : f32
    %348 = vector.broadcast %cst_194 : f32 to vector<1x128xf32>
    %349 = arith.mulf %348, %347 : vector<1x128xf32>
    %350 = arith.addf %346, %349 : vector<1x128xf32>
    %351 = arith.addf %263, %350 : vector<1x128xf32>
    %c0_195 = arith.constant 0 : index
    %c6_196 = arith.constant 6 : index
    %c0_197 = arith.constant 0 : index
    %c0_198 = arith.constant 0 : index
    %352 = vector.load %arg1[%c0_195, %c6_196, %c0_197, %c0_198] : memref<2x8x1x128xf32, #tpu.memory_space<vmem>>, vector<1x1x1x128xf32>
    %353 = vector.shape_cast %352 : vector<1x1x1x128xf32> to vector<1x128xf32>
    %354 = arith.subf %286, %353 : vector<1x128xf32>
    %c1_199 = arith.constant 1 : index
    %c6_200 = arith.constant 6 : index
    %c0_201 = arith.constant 0 : index
    %c0_202 = arith.constant 0 : index
    %355 = vector.load %arg1[%c1_199, %c6_200, %c0_201, %c0_202] : memref<2x8x1x128xf32, #tpu.memory_space<vmem>>, vector<1x1x1x128xf32>
    %356 = vector.shape_cast %355 : vector<1x1x1x128xf32> to vector<1x128xf32>
    %357 = arith.subf %288, %356 : vector<1x128xf32>
    %358 = arith.mulf %354, %354 : vector<1x128xf32>
    %359 = arith.mulf %357, %357 : vector<1x128xf32>
    %360 = arith.addf %358, %359 : vector<1x128xf32>
    %cst_203 = arith.constant 9.99999968E-21 : f32
    %361 = vector.broadcast %cst_203 : f32 to vector<1x128xf32>
    %362 = arith.maximumf %360, %361 : vector<1x128xf32>
    %363 = math.rsqrt %362 : vector<1x128xf32>
    %364 = arith.mulf %363, %363 : vector<1x128xf32>
    %cst_204 = arith.constant 9.99999997E-7 : f32
    %365 = vector.broadcast %cst_204 : f32 to vector<1x128xf32>
    %366 = arith.mulf %365, %364 : vector<1x128xf32>
    %367 = arith.subf %363, %366 : vector<1x128xf32>
    %368 = arith.mulf %364, %363 : vector<1x128xf32>
    %cst_205 = arith.constant 9.99999996E-13 : f32
    %369 = vector.broadcast %cst_205 : f32 to vector<1x128xf32>
    %370 = arith.mulf %369, %368 : vector<1x128xf32>
    %371 = arith.addf %367, %370 : vector<1x128xf32>
    %372 = arith.addf %284, %371 : vector<1x128xf32>
    %c0_206 = arith.constant 0 : index
    %c7_207 = arith.constant 7 : index
    %c0_208 = arith.constant 0 : index
    %c0_209 = arith.constant 0 : index
    %373 = vector.load %arg1[%c0_206, %c7_207, %c0_208, %c0_209] : memref<2x8x1x128xf32, #tpu.memory_space<vmem>>, vector<1x1x1x128xf32>
    %374 = vector.shape_cast %373 : vector<1x1x1x128xf32> to vector<1x128xf32>
    %375 = arith.subf %286, %374 : vector<1x128xf32>
    %c1_210 = arith.constant 1 : index
    %c7_211 = arith.constant 7 : index
    %c0_212 = arith.constant 0 : index
    %c0_213 = arith.constant 0 : index
    %376 = vector.load %arg1[%c1_210, %c7_211, %c0_212, %c0_213] : memref<2x8x1x128xf32, #tpu.memory_space<vmem>>, vector<1x1x1x128xf32>
    %377 = vector.shape_cast %376 : vector<1x1x1x128xf32> to vector<1x128xf32>
    %378 = arith.subf %288, %377 : vector<1x128xf32>
    %379 = arith.mulf %375, %375 : vector<1x128xf32>
    %380 = arith.mulf %378, %378 : vector<1x128xf32>
    %381 = arith.addf %379, %380 : vector<1x128xf32>
    %cst_214 = arith.constant 9.99999968E-21 : f32
    %382 = vector.broadcast %cst_214 : f32 to vector<1x128xf32>
    %383 = arith.maximumf %381, %382 : vector<1x128xf32>
    %384 = math.rsqrt %383 : vector<1x128xf32>
    %385 = arith.mulf %384, %384 : vector<1x128xf32>
    %cst_215 = arith.constant 9.99999997E-7 : f32
    %386 = vector.broadcast %cst_215 : f32 to vector<1x128xf32>
    %387 = arith.mulf %386, %385 : vector<1x128xf32>
    %388 = arith.subf %384, %387 : vector<1x128xf32>
    %389 = arith.mulf %385, %384 : vector<1x128xf32>
    %cst_216 = arith.constant 9.99999996E-13 : f32
    %390 = vector.broadcast %cst_216 : f32 to vector<1x128xf32>
    %391 = arith.mulf %390, %389 : vector<1x128xf32>
    %392 = arith.addf %388, %391 : vector<1x128xf32>
    %393 = arith.addf %309, %392 : vector<1x128xf32>
    %c0_217 = arith.constant 0 : index
    %c3_218 = arith.constant 3 : index
    %c0_219 = arith.constant 0 : index
    %c0_220 = arith.constant 0 : index
    %394 = vector.load %arg1[%c0_217, %c3_218, %c0_219, %c0_220] : memref<2x8x1x128xf32, #tpu.memory_space<vmem>>, vector<1x1x1x128xf32>
    %395 = vector.shape_cast %394 : vector<1x1x1x128xf32> to vector<1x128xf32>
    %c1_221 = arith.constant 1 : index
    %c3_222 = arith.constant 3 : index
    %c0_223 = arith.constant 0 : index
    %c0_224 = arith.constant 0 : index
    %396 = vector.load %arg1[%c1_221, %c3_222, %c0_223, %c0_224] : memref<2x8x1x128xf32, #tpu.memory_space<vmem>>, vector<1x1x1x128xf32>
    %397 = vector.shape_cast %396 : vector<1x1x1x128xf32> to vector<1x128xf32>
    %c0_225 = arith.constant 0 : index
    %c4_226 = arith.constant 4 : index
    %c0_227 = arith.constant 0 : index
    %c0_228 = arith.constant 0 : index
    %398 = vector.load %arg1[%c0_225, %c4_226, %c0_227, %c0_228] : memref<2x8x1x128xf32, #tpu.memory_space<vmem>>, vector<1x1x1x128xf32>
    %399 = vector.shape_cast %398 : vector<1x1x1x128xf32> to vector<1x128xf32>
    %400 = arith.subf %395, %399 : vector<1x128xf32>
    %c1_229 = arith.constant 1 : index
    %c4_230 = arith.constant 4 : index
    %c0_231 = arith.constant 0 : index
    %c0_232 = arith.constant 0 : index
    %401 = vector.load %arg1[%c1_229, %c4_230, %c0_231, %c0_232] : memref<2x8x1x128xf32, #tpu.memory_space<vmem>>, vector<1x1x1x128xf32>
    %402 = vector.shape_cast %401 : vector<1x1x1x128xf32> to vector<1x128xf32>
    %403 = arith.subf %397, %402 : vector<1x128xf32>
    %404 = arith.mulf %400, %400 : vector<1x128xf32>
    %405 = arith.mulf %403, %403 : vector<1x128xf32>
    %406 = arith.addf %404, %405 : vector<1x128xf32>
    %cst_233 = arith.constant 9.99999968E-21 : f32
    %407 = vector.broadcast %cst_233 : f32 to vector<1x128xf32>
    %408 = arith.maximumf %406, %407 : vector<1x128xf32>
    %409 = math.rsqrt %408 : vector<1x128xf32>
    %410 = arith.mulf %409, %409 : vector<1x128xf32>
    %cst_234 = arith.constant 9.99999997E-7 : f32
    %411 = vector.broadcast %cst_234 : f32 to vector<1x128xf32>
    %412 = arith.mulf %411, %410 : vector<1x128xf32>
    %413 = arith.subf %409, %412 : vector<1x128xf32>
    %414 = arith.mulf %410, %409 : vector<1x128xf32>
    %cst_235 = arith.constant 9.99999996E-13 : f32
    %415 = vector.broadcast %cst_235 : f32 to vector<1x128xf32>
    %416 = arith.mulf %415, %414 : vector<1x128xf32>
    %417 = arith.addf %413, %416 : vector<1x128xf32>
    %418 = arith.addf %330, %417 : vector<1x128xf32>
    %c0_236 = arith.constant 0 : index
    %c5_237 = arith.constant 5 : index
    %c0_238 = arith.constant 0 : index
    %c0_239 = arith.constant 0 : index
    %419 = vector.load %arg1[%c0_236, %c5_237, %c0_238, %c0_239] : memref<2x8x1x128xf32, #tpu.memory_space<vmem>>, vector<1x1x1x128xf32>
    %420 = vector.shape_cast %419 : vector<1x1x1x128xf32> to vector<1x128xf32>
    %421 = arith.subf %395, %420 : vector<1x128xf32>
    %c1_240 = arith.constant 1 : index
    %c5_241 = arith.constant 5 : index
    %c0_242 = arith.constant 0 : index
    %c0_243 = arith.constant 0 : index
    %422 = vector.load %arg1[%c1_240, %c5_241, %c0_242, %c0_243] : memref<2x8x1x128xf32, #tpu.memory_space<vmem>>, vector<1x1x1x128xf32>
    %423 = vector.shape_cast %422 : vector<1x1x1x128xf32> to vector<1x128xf32>
    %424 = arith.subf %397, %423 : vector<1x128xf32>
    %425 = arith.mulf %421, %421 : vector<1x128xf32>
    %426 = arith.mulf %424, %424 : vector<1x128xf32>
    %427 = arith.addf %425, %426 : vector<1x128xf32>
    %cst_244 = arith.constant 9.99999968E-21 : f32
    %428 = vector.broadcast %cst_244 : f32 to vector<1x128xf32>
    %429 = arith.maximumf %427, %428 : vector<1x128xf32>
    %430 = math.rsqrt %429 : vector<1x128xf32>
    %431 = arith.mulf %430, %430 : vector<1x128xf32>
    %cst_245 = arith.constant 9.99999997E-7 : f32
    %432 = vector.broadcast %cst_245 : f32 to vector<1x128xf32>
    %433 = arith.mulf %432, %431 : vector<1x128xf32>
    %434 = arith.subf %430, %433 : vector<1x128xf32>
    %435 = arith.mulf %431, %430 : vector<1x128xf32>
    %cst_246 = arith.constant 9.99999996E-13 : f32
    %436 = vector.broadcast %cst_246 : f32 to vector<1x128xf32>
    %437 = arith.mulf %436, %435 : vector<1x128xf32>
    %438 = arith.addf %434, %437 : vector<1x128xf32>
    %439 = arith.addf %351, %438 : vector<1x128xf32>
    %c0_247 = arith.constant 0 : index
    %c6_248 = arith.constant 6 : index
    %c0_249 = arith.constant 0 : index
    %c0_250 = arith.constant 0 : index
    %440 = vector.load %arg1[%c0_247, %c6_248, %c0_249, %c0_250] : memref<2x8x1x128xf32, #tpu.memory_space<vmem>>, vector<1x1x1x128xf32>
    %441 = vector.shape_cast %440 : vector<1x1x1x128xf32> to vector<1x128xf32>
    %442 = arith.subf %395, %441 : vector<1x128xf32>
    %c1_251 = arith.constant 1 : index
    %c6_252 = arith.constant 6 : index
    %c0_253 = arith.constant 0 : index
    %c0_254 = arith.constant 0 : index
    %443 = vector.load %arg1[%c1_251, %c6_252, %c0_253, %c0_254] : memref<2x8x1x128xf32, #tpu.memory_space<vmem>>, vector<1x1x1x128xf32>
    %444 = vector.shape_cast %443 : vector<1x1x1x128xf32> to vector<1x128xf32>
    %445 = arith.subf %397, %444 : vector<1x128xf32>
    %446 = arith.mulf %442, %442 : vector<1x128xf32>
    %447 = arith.mulf %445, %445 : vector<1x128xf32>
    %448 = arith.addf %446, %447 : vector<1x128xf32>
    %cst_255 = arith.constant 9.99999968E-21 : f32
    %449 = vector.broadcast %cst_255 : f32 to vector<1x128xf32>
    %450 = arith.maximumf %448, %449 : vector<1x128xf32>
    %451 = math.rsqrt %450 : vector<1x128xf32>
    %452 = arith.mulf %451, %451 : vector<1x128xf32>
    %cst_256 = arith.constant 9.99999997E-7 : f32
    %453 = vector.broadcast %cst_256 : f32 to vector<1x128xf32>
    %454 = arith.mulf %453, %452 : vector<1x128xf32>
    %455 = arith.subf %451, %454 : vector<1x128xf32>
    %456 = arith.mulf %452, %451 : vector<1x128xf32>
    %cst_257 = arith.constant 9.99999996E-13 : f32
    %457 = vector.broadcast %cst_257 : f32 to vector<1x128xf32>
    %458 = arith.mulf %457, %456 : vector<1x128xf32>
    %459 = arith.addf %455, %458 : vector<1x128xf32>
    %460 = arith.addf %372, %459 : vector<1x128xf32>
    %c0_258 = arith.constant 0 : index
    %c7_259 = arith.constant 7 : index
    %c0_260 = arith.constant 0 : index
    %c0_261 = arith.constant 0 : index
    %461 = vector.load %arg1[%c0_258, %c7_259, %c0_260, %c0_261] : memref<2x8x1x128xf32, #tpu.memory_space<vmem>>, vector<1x1x1x128xf32>
    %462 = vector.shape_cast %461 : vector<1x1x1x128xf32> to vector<1x128xf32>
    %463 = arith.subf %395, %462 : vector<1x128xf32>
    %c1_262 = arith.constant 1 : index
    %c7_263 = arith.constant 7 : index
    %c0_264 = arith.constant 0 : index
    %c0_265 = arith.constant 0 : index
    %464 = vector.load %arg1[%c1_262, %c7_263, %c0_264, %c0_265] : memref<2x8x1x128xf32, #tpu.memory_space<vmem>>, vector<1x1x1x128xf32>
    %465 = vector.shape_cast %464 : vector<1x1x1x128xf32> to vector<1x128xf32>
    %466 = arith.subf %397, %465 : vector<1x128xf32>
    %467 = arith.mulf %463, %463 : vector<1x128xf32>
    %468 = arith.mulf %466, %466 : vector<1x128xf32>
    %469 = arith.addf %467, %468 : vector<1x128xf32>
    %cst_266 = arith.constant 9.99999968E-21 : f32
    %470 = vector.broadcast %cst_266 : f32 to vector<1x128xf32>
    %471 = arith.maximumf %469, %470 : vector<1x128xf32>
    %472 = math.rsqrt %471 : vector<1x128xf32>
    %473 = arith.mulf %472, %472 : vector<1x128xf32>
    %cst_267 = arith.constant 9.99999997E-7 : f32
    %474 = vector.broadcast %cst_267 : f32 to vector<1x128xf32>
    %475 = arith.mulf %474, %473 : vector<1x128xf32>
    %476 = arith.subf %472, %475 : vector<1x128xf32>
    %477 = arith.mulf %473, %472 : vector<1x128xf32>
    %cst_268 = arith.constant 9.99999996E-13 : f32
    %478 = vector.broadcast %cst_268 : f32 to vector<1x128xf32>
    %479 = arith.mulf %478, %477 : vector<1x128xf32>
    %480 = arith.addf %476, %479 : vector<1x128xf32>
    %481 = arith.addf %393, %480 : vector<1x128xf32>
    %c0_269 = arith.constant 0 : index
    %c4_270 = arith.constant 4 : index
    %c0_271 = arith.constant 0 : index
    %c0_272 = arith.constant 0 : index
    %482 = vector.load %arg1[%c0_269, %c4_270, %c0_271, %c0_272] : memref<2x8x1x128xf32, #tpu.memory_space<vmem>>, vector<1x1x1x128xf32>
    %483 = vector.shape_cast %482 : vector<1x1x1x128xf32> to vector<1x128xf32>
    %c1_273 = arith.constant 1 : index
    %c4_274 = arith.constant 4 : index
    %c0_275 = arith.constant 0 : index
    %c0_276 = arith.constant 0 : index
    %484 = vector.load %arg1[%c1_273, %c4_274, %c0_275, %c0_276] : memref<2x8x1x128xf32, #tpu.memory_space<vmem>>, vector<1x1x1x128xf32>
    %485 = vector.shape_cast %484 : vector<1x1x1x128xf32> to vector<1x128xf32>
    %c0_277 = arith.constant 0 : index
    %c5_278 = arith.constant 5 : index
    %c0_279 = arith.constant 0 : index
    %c0_280 = arith.constant 0 : index
    %486 = vector.load %arg1[%c0_277, %c5_278, %c0_279, %c0_280] : memref<2x8x1x128xf32, #tpu.memory_space<vmem>>, vector<1x1x1x128xf32>
    %487 = vector.shape_cast %486 : vector<1x1x1x128xf32> to vector<1x128xf32>
    %488 = arith.subf %483, %487 : vector<1x128xf32>
    %c1_281 = arith.constant 1 : index
    %c5_282 = arith.constant 5 : index
    %c0_283 = arith.constant 0 : index
    %c0_284 = arith.constant 0 : index
    %489 = vector.load %arg1[%c1_281, %c5_282, %c0_283, %c0_284] : memref<2x8x1x128xf32, #tpu.memory_space<vmem>>, vector<1x1x1x128xf32>
    %490 = vector.shape_cast %489 : vector<1x1x1x128xf32> to vector<1x128xf32>
    %491 = arith.subf %485, %490 : vector<1x128xf32>
    %492 = arith.mulf %488, %488 : vector<1x128xf32>
    %493 = arith.mulf %491, %491 : vector<1x128xf32>
    %494 = arith.addf %492, %493 : vector<1x128xf32>
    %cst_285 = arith.constant 9.99999968E-21 : f32
    %495 = vector.broadcast %cst_285 : f32 to vector<1x128xf32>
    %496 = arith.maximumf %494, %495 : vector<1x128xf32>
    %497 = math.rsqrt %496 : vector<1x128xf32>
    %498 = arith.mulf %497, %497 : vector<1x128xf32>
    %cst_286 = arith.constant 9.99999997E-7 : f32
    %499 = vector.broadcast %cst_286 : f32 to vector<1x128xf32>
    %500 = arith.mulf %499, %498 : vector<1x128xf32>
    %501 = arith.subf %497, %500 : vector<1x128xf32>
    %502 = arith.mulf %498, %497 : vector<1x128xf32>
    %cst_287 = arith.constant 9.99999996E-13 : f32
    %503 = vector.broadcast %cst_287 : f32 to vector<1x128xf32>
    %504 = arith.mulf %503, %502 : vector<1x128xf32>
    %505 = arith.addf %501, %504 : vector<1x128xf32>
    %506 = arith.addf %418, %505 : vector<1x128xf32>
    %c0_288 = arith.constant 0 : index
    %c6_289 = arith.constant 6 : index
    %c0_290 = arith.constant 0 : index
    %c0_291 = arith.constant 0 : index
    %507 = vector.load %arg1[%c0_288, %c6_289, %c0_290, %c0_291] : memref<2x8x1x128xf32, #tpu.memory_space<vmem>>, vector<1x1x1x128xf32>
    %508 = vector.shape_cast %507 : vector<1x1x1x128xf32> to vector<1x128xf32>
    %509 = arith.subf %483, %508 : vector<1x128xf32>
    %c1_292 = arith.constant 1 : index
    %c6_293 = arith.constant 6 : index
    %c0_294 = arith.constant 0 : index
    %c0_295 = arith.constant 0 : index
    %510 = vector.load %arg1[%c1_292, %c6_293, %c0_294, %c0_295] : memref<2x8x1x128xf32, #tpu.memory_space<vmem>>, vector<1x1x1x128xf32>
    %511 = vector.shape_cast %510 : vector<1x1x1x128xf32> to vector<1x128xf32>
    %512 = arith.subf %485, %511 : vector<1x128xf32>
    %513 = arith.mulf %509, %509 : vector<1x128xf32>
    %514 = arith.mulf %512, %512 : vector<1x128xf32>
    %515 = arith.addf %513, %514 : vector<1x128xf32>
    %cst_296 = arith.constant 9.99999968E-21 : f32
    %516 = vector.broadcast %cst_296 : f32 to vector<1x128xf32>
    %517 = arith.maximumf %515, %516 : vector<1x128xf32>
    %518 = math.rsqrt %517 : vector<1x128xf32>
    %519 = arith.mulf %518, %518 : vector<1x128xf32>
    %cst_297 = arith.constant 9.99999997E-7 : f32
    %520 = vector.broadcast %cst_297 : f32 to vector<1x128xf32>
    %521 = arith.mulf %520, %519 : vector<1x128xf32>
    %522 = arith.subf %518, %521 : vector<1x128xf32>
    %523 = arith.mulf %519, %518 : vector<1x128xf32>
    %cst_298 = arith.constant 9.99999996E-13 : f32
    %524 = vector.broadcast %cst_298 : f32 to vector<1x128xf32>
    %525 = arith.mulf %524, %523 : vector<1x128xf32>
    %526 = arith.addf %522, %525 : vector<1x128xf32>
    %527 = arith.addf %439, %526 : vector<1x128xf32>
    %c0_299 = arith.constant 0 : index
    %c7_300 = arith.constant 7 : index
    %c0_301 = arith.constant 0 : index
    %c0_302 = arith.constant 0 : index
    %528 = vector.load %arg1[%c0_299, %c7_300, %c0_301, %c0_302] : memref<2x8x1x128xf32, #tpu.memory_space<vmem>>, vector<1x1x1x128xf32>
    %529 = vector.shape_cast %528 : vector<1x1x1x128xf32> to vector<1x128xf32>
    %530 = arith.subf %483, %529 : vector<1x128xf32>
    %c1_303 = arith.constant 1 : index
    %c7_304 = arith.constant 7 : index
    %c0_305 = arith.constant 0 : index
    %c0_306 = arith.constant 0 : index
    %531 = vector.load %arg1[%c1_303, %c7_304, %c0_305, %c0_306] : memref<2x8x1x128xf32, #tpu.memory_space<vmem>>, vector<1x1x1x128xf32>
    %532 = vector.shape_cast %531 : vector<1x1x1x128xf32> to vector<1x128xf32>
    %533 = arith.subf %485, %532 : vector<1x128xf32>
    %534 = arith.mulf %530, %530 : vector<1x128xf32>
    %535 = arith.mulf %533, %533 : vector<1x128xf32>
    %536 = arith.addf %534, %535 : vector<1x128xf32>
    %cst_307 = arith.constant 9.99999968E-21 : f32
    %537 = vector.broadcast %cst_307 : f32 to vector<1x128xf32>
    %538 = arith.maximumf %536, %537 : vector<1x128xf32>
    %539 = math.rsqrt %538 : vector<1x128xf32>
    %540 = arith.mulf %539, %539 : vector<1x128xf32>
    %cst_308 = arith.constant 9.99999997E-7 : f32
    %541 = vector.broadcast %cst_308 : f32 to vector<1x128xf32>
    %542 = arith.mulf %541, %540 : vector<1x128xf32>
    %543 = arith.subf %539, %542 : vector<1x128xf32>
    %544 = arith.mulf %540, %539 : vector<1x128xf32>
    %cst_309 = arith.constant 9.99999996E-13 : f32
    %545 = vector.broadcast %cst_309 : f32 to vector<1x128xf32>
    %546 = arith.mulf %545, %544 : vector<1x128xf32>
    %547 = arith.addf %543, %546 : vector<1x128xf32>
    %548 = arith.addf %460, %547 : vector<1x128xf32>
    %c0_310 = arith.constant 0 : index
    %c5_311 = arith.constant 5 : index
    %c0_312 = arith.constant 0 : index
    %c0_313 = arith.constant 0 : index
    %549 = vector.load %arg1[%c0_310, %c5_311, %c0_312, %c0_313] : memref<2x8x1x128xf32, #tpu.memory_space<vmem>>, vector<1x1x1x128xf32>
    %550 = vector.shape_cast %549 : vector<1x1x1x128xf32> to vector<1x128xf32>
    %c1_314 = arith.constant 1 : index
    %c5_315 = arith.constant 5 : index
    %c0_316 = arith.constant 0 : index
    %c0_317 = arith.constant 0 : index
    %551 = vector.load %arg1[%c1_314, %c5_315, %c0_316, %c0_317] : memref<2x8x1x128xf32, #tpu.memory_space<vmem>>, vector<1x1x1x128xf32>
    %552 = vector.shape_cast %551 : vector<1x1x1x128xf32> to vector<1x128xf32>
    %c0_318 = arith.constant 0 : index
    %c6_319 = arith.constant 6 : index
    %c0_320 = arith.constant 0 : index
    %c0_321 = arith.constant 0 : index
    %553 = vector.load %arg1[%c0_318, %c6_319, %c0_320, %c0_321] : memref<2x8x1x128xf32, #tpu.memory_space<vmem>>, vector<1x1x1x128xf32>
    %554 = vector.shape_cast %553 : vector<1x1x1x128xf32> to vector<1x128xf32>
    %555 = arith.subf %550, %554 : vector<1x128xf32>
    %c1_322 = arith.constant 1 : index
    %c6_323 = arith.constant 6 : index
    %c0_324 = arith.constant 0 : index
    %c0_325 = arith.constant 0 : index
    %556 = vector.load %arg1[%c1_322, %c6_323, %c0_324, %c0_325] : memref<2x8x1x128xf32, #tpu.memory_space<vmem>>, vector<1x1x1x128xf32>
    %557 = vector.shape_cast %556 : vector<1x1x1x128xf32> to vector<1x128xf32>
    %558 = arith.subf %552, %557 : vector<1x128xf32>
    %559 = arith.mulf %555, %555 : vector<1x128xf32>
    %560 = arith.mulf %558, %558 : vector<1x128xf32>
    %561 = arith.addf %559, %560 : vector<1x128xf32>
    %cst_326 = arith.constant 9.99999968E-21 : f32
    %562 = vector.broadcast %cst_326 : f32 to vector<1x128xf32>
    %563 = arith.maximumf %561, %562 : vector<1x128xf32>
    %564 = math.rsqrt %563 : vector<1x128xf32>
    %565 = arith.mulf %564, %564 : vector<1x128xf32>
    %cst_327 = arith.constant 9.99999997E-7 : f32
    %566 = vector.broadcast %cst_327 : f32 to vector<1x128xf32>
    %567 = arith.mulf %566, %565 : vector<1x128xf32>
    %568 = arith.subf %564, %567 : vector<1x128xf32>
    %569 = arith.mulf %565, %564 : vector<1x128xf32>
    %cst_328 = arith.constant 9.99999996E-13 : f32
    %570 = vector.broadcast %cst_328 : f32 to vector<1x128xf32>
    %571 = arith.mulf %570, %569 : vector<1x128xf32>
    %572 = arith.addf %568, %571 : vector<1x128xf32>
    %573 = arith.addf %481, %572 : vector<1x128xf32>
    %c0_329 = arith.constant 0 : index
    %c7_330 = arith.constant 7 : index
    %c0_331 = arith.constant 0 : index
    %c0_332 = arith.constant 0 : index
    %574 = vector.load %arg1[%c0_329, %c7_330, %c0_331, %c0_332] : memref<2x8x1x128xf32, #tpu.memory_space<vmem>>, vector<1x1x1x128xf32>
    %575 = vector.shape_cast %574 : vector<1x1x1x128xf32> to vector<1x128xf32>
    %576 = arith.subf %550, %575 : vector<1x128xf32>
    %c1_333 = arith.constant 1 : index
    %c7_334 = arith.constant 7 : index
    %c0_335 = arith.constant 0 : index
    %c0_336 = arith.constant 0 : index
    %577 = vector.load %arg1[%c1_333, %c7_334, %c0_335, %c0_336] : memref<2x8x1x128xf32, #tpu.memory_space<vmem>>, vector<1x1x1x128xf32>
    %578 = vector.shape_cast %577 : vector<1x1x1x128xf32> to vector<1x128xf32>
    %579 = arith.subf %552, %578 : vector<1x128xf32>
    %580 = arith.mulf %576, %576 : vector<1x128xf32>
    %581 = arith.mulf %579, %579 : vector<1x128xf32>
    %582 = arith.addf %580, %581 : vector<1x128xf32>
    %cst_337 = arith.constant 9.99999968E-21 : f32
    %583 = vector.broadcast %cst_337 : f32 to vector<1x128xf32>
    %584 = arith.maximumf %582, %583 : vector<1x128xf32>
    %585 = math.rsqrt %584 : vector<1x128xf32>
    %586 = arith.mulf %585, %585 : vector<1x128xf32>
    %cst_338 = arith.constant 9.99999997E-7 : f32
    %587 = vector.broadcast %cst_338 : f32 to vector<1x128xf32>
    %588 = arith.mulf %587, %586 : vector<1x128xf32>
    %589 = arith.subf %585, %588 : vector<1x128xf32>
    %590 = arith.mulf %586, %585 : vector<1x128xf32>
    %cst_339 = arith.constant 9.99999996E-13 : f32
    %591 = vector.broadcast %cst_339 : f32 to vector<1x128xf32>
    %592 = arith.mulf %591, %590 : vector<1x128xf32>
    %593 = arith.addf %589, %592 : vector<1x128xf32>
    %594 = arith.addf %506, %593 : vector<1x128xf32>
    %c0_340 = arith.constant 0 : index
    %c6_341 = arith.constant 6 : index
    %c0_342 = arith.constant 0 : index
    %c0_343 = arith.constant 0 : index
    %595 = vector.load %arg1[%c0_340, %c6_341, %c0_342, %c0_343] : memref<2x8x1x128xf32, #tpu.memory_space<vmem>>, vector<1x1x1x128xf32>
    %596 = vector.shape_cast %595 : vector<1x1x1x128xf32> to vector<1x128xf32>
    %c1_344 = arith.constant 1 : index
    %c6_345 = arith.constant 6 : index
    %c0_346 = arith.constant 0 : index
    %c0_347 = arith.constant 0 : index
    %597 = vector.load %arg1[%c1_344, %c6_345, %c0_346, %c0_347] : memref<2x8x1x128xf32, #tpu.memory_space<vmem>>, vector<1x1x1x128xf32>
    %598 = vector.shape_cast %597 : vector<1x1x1x128xf32> to vector<1x128xf32>
    %c0_348 = arith.constant 0 : index
    %c7_349 = arith.constant 7 : index
    %c0_350 = arith.constant 0 : index
    %c0_351 = arith.constant 0 : index
    %599 = vector.load %arg1[%c0_348, %c7_349, %c0_350, %c0_351] : memref<2x8x1x128xf32, #tpu.memory_space<vmem>>, vector<1x1x1x128xf32>
    %600 = vector.shape_cast %599 : vector<1x1x1x128xf32> to vector<1x128xf32>
    %601 = arith.subf %596, %600 : vector<1x128xf32>
    %c1_352 = arith.constant 1 : index
    %c7_353 = arith.constant 7 : index
    %c0_354 = arith.constant 0 : index
    %c0_355 = arith.constant 0 : index
    %602 = vector.load %arg1[%c1_352, %c7_353, %c0_354, %c0_355] : memref<2x8x1x128xf32, #tpu.memory_space<vmem>>, vector<1x1x1x128xf32>
    %603 = vector.shape_cast %602 : vector<1x1x1x128xf32> to vector<1x128xf32>
    %604 = arith.subf %598, %603 : vector<1x128xf32>
    %605 = arith.mulf %601, %601 : vector<1x128xf32>
    %606 = arith.mulf %604, %604 : vector<1x128xf32>
    %607 = arith.addf %605, %606 : vector<1x128xf32>
    %cst_356 = arith.constant 9.99999968E-21 : f32
    %608 = vector.broadcast %cst_356 : f32 to vector<1x128xf32>
    %609 = arith.maximumf %607, %608 : vector<1x128xf32>
    %610 = math.rsqrt %609 : vector<1x128xf32>
    %611 = arith.mulf %610, %610 : vector<1x128xf32>
    %cst_357 = arith.constant 9.99999997E-7 : f32
    %612 = vector.broadcast %cst_357 : f32 to vector<1x128xf32>
    %613 = arith.mulf %612, %611 : vector<1x128xf32>
    %614 = arith.subf %610, %613 : vector<1x128xf32>
    %615 = arith.mulf %611, %610 : vector<1x128xf32>
    %cst_358 = arith.constant 9.99999996E-13 : f32
    %616 = vector.broadcast %cst_358 : f32 to vector<1x128xf32>
    %617 = arith.mulf %616, %615 : vector<1x128xf32>
    %618 = arith.addf %614, %617 : vector<1x128xf32>
    %619 = arith.addf %527, %618 : vector<1x128xf32>
    %620 = arith.addf %548, %573 : vector<1x128xf32>
    %621 = arith.addf %620, %594 : vector<1x128xf32>
    %622 = arith.addf %621, %619 : vector<1x128xf32>
    %c0_359 = arith.constant 0 : index
    %c0_360 = arith.constant 0 : index
    %623 = vector.load %arg2[%c0_359, %c0_360] : memref<1x128xf32, #tpu.memory_space<vmem>>, vector<1x128xf32>
    tpu.vector_store %arg2[%c0_359, %c0_360], %622 {strides = array<i32>} : memref<1x128xf32, #tpu.memory_space<vmem>>, vector<1x128xf32>,
    return
  }
  func.func @transform_0(%arg0: i32) -> (i32, i32, i32, i32) {
    %c0_i32 = arith.constant 0 : i32
    %c0_i32_0 = arith.constant 0 : i32
    %c0_i32_1 = arith.constant 0 : i32
    %c0_i32_2 = arith.constant 0 : i32
    return %c0_i32, %c0_i32_0, %arg0, %c0_i32_1 : i32, i32, i32, i32
  }
  func.func @transform_1(%arg0: i32) -> (i32, i32) {
    %c0_i32 = arith.constant 0 : i32
    %c0_i32_0 = arith.constant 0 : i32
    return %arg0, %c0_i32 : i32, i32
  }
}

</mosaic_0001>

<bundles_post_ra>
// kernel: tpu_custom_call.1
= control target key start
LH: loop header
LB: loop body
LE: loop exit
PB: predicated region body
PF: predicated region fallthrough
CT: control target
= control target key end

     0   :  { %6 = vsyncpa [#allocation3], 0  ;;  %s887_s0 = inlined_call_operand.hbm [shape: f32[2,8,1,128], index: 0, kind: input, shape index: {}]   ;;  %s888_s1 = inlined_call_operand.hbm [shape: f32[1,128], index: 1, kind: output, shape index: {}]  }
   0x1   :  { %7 = vsyncpa [#allocation4], 0  ;;  %s573_s6 = smov [#allocation2]   ;;  %s525_s10 = scalar_lea.hbm %s887_s0, 256 }
   0x2   :  { %s13_s7 = sshll.u32 %s573_s6, 4  ;;  %p526_p0 = scmp.ne.s32.totalorder %s887_s0, %s525_s10  ;;  %s14_s7 = int_to_ptr.vmem [resolvable:$true] %s13_s7 }
   0x3   :  { %p529_p1 = scmp.lt.u32.totalorder %s525_s10, %s887_s0 }
   0x5   :  { %p531_p2 = pnand %p529_p1, %p526_p0 }
   0x7   :  { %534 = shalt.err (!%p531_p2)
}
   0x8   :  { %s535_s15 = scalar_lea.vmem %s14_s7, 256  ;;  %p540_p4 = scmp.lt.s32.totalorder %s14_s7, %s14_s7 }
   0x9   :  { %p536_p3 = scmp.ne.s32.totalorder %s14_s7, %s535_s15  ;;  %p541_p5 = scmp.lt.s32.totalorder %s535_s15, %s535_s15 }
   0xb   :  { %p542_p6 = por %p541_p5, %p540_p4 }
   0xd   :  { %p543_p7 = pnand %p542_p6, %p536_p3 }
   0xf   :  { %546 = shalt.err (!%p543_p7)
}
  0x10   :  { %s574_s16 = smov 16   ;;  %s575_s17 = smov 1  }
  0x11   :  { %19 = dma.hbm_to_vmem [thread:$0]  %s887_s0, 256, %s14_s7, [#allocation3], %s574_s16, %s574_s16, %s575_s17  }
  0x12   :  { %569 = dma.done.wait [#allocation3], 256  }
  0x13   :  { %570 = vsyncadd [#allocation3], 4294967040  ;;  %v23_v0 = vld [vmem:[#allocation2] sm:$0x1]  ;;  %v25_v1 = vld [vmem:[#allocation2 + $0x8] sm:$0x1] }
  0x14   :  { %v599_v2 = vld [vmem:[#allocation2 + $0x1] sm:$0x1]  ;;  %v602_v4 = vld [vmem:[#allocation2 + $0x9] sm:$0x1]  ;;  %v604_v5 = vld [vmem:[#allocation2 + $0x2] sm:$0x1] }
  0x15   :  { %v28_v3 = vsub.f32 %v23_v0, %v599_v2  ;;  %v606_v6 = vld [vmem:[#allocation2 + $0xa] sm:$0x1]  ;;  %v31_v7 = vsub.f32 %v25_v1, %v602_v4  ;;  %v46_v8 = vsub.f32 %v23_v0, %v604_v5  ;;  %v611_v10 = vld [vmem:[#allocation2 + $0x3] sm:$0x1]  ;;  %v613_v11 = vld [vmem:[#allocation2 + $0xb] sm:$0x1]  ;;  %v152_v13 = vsub.f32 %v599_v2, %v604_v5 }
  0x16   :  { %v49_v9 = vsub.f32 %v25_v1, %v606_v6  ;;  %v615_v12 = vld [vmem:[#allocation2 + $0x4] sm:$0x1]  ;;  %v64_v15 = vsub.f32 %v23_v0, %v611_v10  ;;  %v67_v16 = vsub.f32 %v25_v1, %v613_v11  ;;  %v622_v18 = vld [vmem:[#allocation2 + $0xc] sm:$0x1]  ;;  %v624_v19 = vld [vmem:[#allocation2 + $0x5] sm:$0x1]  ;;  %v153_v54 = vsub.f32 %v602_v4, %v606_v6 }
  0x17   :  { %v32_v14 = vmul.f32 %v28_v3, %v28_v3  ;;  %v82_v17 = vsub.f32 %v23_v0, %v615_v12  ;;  %v626_v20 = vld [vmem:[#allocation2 + $0xd] sm:$0x1]  ;;  %v33_v21 = vmul.f32 %v31_v7, %v31_v7  ;;  %v50_v22 = vmul.f32 %v46_v8, %v46_v8  ;;  %v629_v25 = vld [vmem:[#allocation2 + $0x6] sm:$0x1]  ;;  %v631_v26 = vld [vmem:[#allocation2 + $0xe] sm:$0x1] }
  0x18   :  { %v51_v23 = vmul.f32 %v49_v9, %v49_v9  ;;  %v85_v24 = vsub.f32 %v25_v1, %v622_v18  ;;  %v68_v27 = vmul.f32 %v64_v15, %v64_v15  ;;  %v69_v28 = vmul.f32 %v67_v16, %v67_v16  ;;  %v635_v35 = vld [vmem:[#allocation2 + $0x7] sm:$0x1]  ;;  %v639_v40 = vld [vmem:[#allocation2 + $0xf] sm:$0x1]  ;;  %s576_s0 = smov [#allocation5]  }
  0x19   :  { %v86_v29 = vmul.f32 %v82_v17, %v82_v17  ;;  %v100_v30 = vsub.f32 %v23_v0, %v624_v19  ;;  %v34_v31 = vadd.f32 %v33_v21, %v32_v14  ;;  %v103_v34 = vsub.f32 %v25_v1, %v626_v20  ;;  %s456_s20 = sshll.u32 %s576_s0, 4  ;;  %s457_s20 = int_to_ptr.vmem [resolvable:$true] %s456_s20 }
  0x1a   :  { %v52_v32 = vadd.f32 %v51_v23, %v50_v22  ;;  %v87_v33 = vmul.f32 %v85_v24, %v85_v24  ;;  %v70_v36 = vadd.f32 %v69_v28, %v68_v27  ;;  %v118_v38 = vsub.f32 %v23_v0, %v629_v25  ;;  %s547_s21 = scalar_lea.vmem %s457_s20, 16  ;;  %s551_s22 = scalar_lea.vmem %s457_s20, 32 }
  0x1b   :  { %v104_v37 = vmul.f32 %v100_v30, %v100_v30  ;;  %v121_v39 = vsub.f32 %v25_v1, %v631_v26  ;;  %v35_v41 = vmax.f32 %v34_v31, 1e-20  ;;  %v105_v44 = vmul.f32 %v103_v34, %v103_v34  ;;  %p548_p8 = scmp.ne.s32.totalorder %s457_s20, %s547_s21  ;;  %p552_p9 = scmp.lt.s32.totalorder %s457_s20, %s457_s20 }
  0x1c   :  { %v53_v42 = vmax.f32 %v52_v32, 1e-20  ;;  %v88_v43 = vadd.f32 %v87_v33, %v86_v29  ;;  %v71_v45 = vmax.f32 %v70_v36, 1e-20  ;;  %v122_v46 = vmul.f32 %v118_v38, %v118_v38  ;;  %p553_p10 = scmp.lt.s32.totalorder %s551_s22, %s547_s21 }
  0x1d   :  { %v123_v47 = vmul.f32 %v121_v39, %v121_v39  ;;  %v136_v48 = vsub.f32 %v23_v0, %v635_v35  ;;  %469 = vrsqrt.f32 %v35_v41  ;;  %v106_v50 = vadd.f32 %v105_v44, %v104_v37 }
  0x1e   :  { %v89_v49 = vmax.f32 %v88_v43, 1e-20  ;;  %v139_v51 = vsub.f32 %v25_v1, %v639_v40  ;;  %471 = vrsqrt.f32 %v53_v42  ;;  %v154_v57 = vmul.f32 %v152_v13, %v152_v13  ;;  %p554_p11 = por %p553_p10, %p552_p9 }
  0x1f   :  { %v124_v52 = vadd.f32 %v123_v47, %v122_v46  ;;  %v140_v53 = vmul.f32 %v136_v48, %v136_v48  ;;  %473 = vrsqrt.f32 %v71_v45  ;;  %v107_v55 = vmax.f32 %v106_v50, 1e-20 }
  0x20   :  { %v141_v56 = vmul.f32 %v139_v51, %v139_v51  ;;  %v155_v59 = vmul.f32 %v153_v54, %v153_v54  ;;  %475 = vrsqrt.f32 %v89_v49  ;;  %v166_v62 = vsub.f32 %v599_v2, %v611_v10  ;;  %p555_p12 = pnand %p554_p11, %p548_p8 }
  0x21   :  { %v125_v58 = vmax.f32 %v124_v52, 1e-20  ;;  %477 = vrsqrt.f32 %v107_v55  ;;  %v167_v63 = vsub.f32 %v602_v4, %v613_v11  ;;  %v180_v3 = vsub.f32 %v599_v2, %v615_v12 }
  0x22   :  { %v142_v60 = vadd.f32 %v141_v56, %v140_v53  ;;  %v156_v61 = vadd.f32 %v155_v59, %v154_v57  ;;  %v181_v7 = vsub.f32 %v602_v4, %v622_v18  ;;  %v168_v8 = vmul.f32 %v166_v62, %v166_v62 }
  0x23   :  { %479 = vrsqrt.f32 %v125_v58  ;;  %v169_v9 = vmul.f32 %v167_v63, %v167_v63  ;;  %v182_v15 = vmul.f32 %v180_v3, %v180_v3  ;;  %v194_v21 = vsub.f32 %v599_v2, %v624_v19 }
  0x24   :  { %v143_v0 = vmax.f32 %v142_v60, 1e-20  ;;  %v157_v1 = vmax.f32 %v156_v61, 1e-20  ;;  %v183_v17 = vmul.f32 %v181_v7, %v181_v7  ;;  %v195_v22 = vsub.f32 %v602_v4, %v626_v20 }
  0x25   :  { %v208_v23 = vsub.f32 %v599_v2, %v629_v25  ;;  %v170_v28 = vadd.f32 %v169_v9, %v168_v8  ;;  %v209_v30 = vsub.f32 %v602_v4, %v631_v26  ;;  %v196_v34 = vmul.f32 %v194_v21, %v194_v21 }
  0x26   :  { %481 = vrsqrt.f32 %v143_v0  ;;  %v184_v33 = vadd.f32 %v183_v17, %v182_v15  ;;  %v197_v36 = vmul.f32 %v195_v22, %v195_v22  ;;  %v222_v50 = vsub.f32 %v599_v2, %v635_v35 }
  0x27   :  { %v470_v13 = vpop.eup %469  ;;  %483 = vrsqrt.f32 %v157_v1  ;;  %v210_v37 = vmul.f32 %v208_v23, %v208_v23  ;;  %v171_v43 = vmax.f32 %v170_v28, 1e-20  ;;  %v211_v47 = vmul.f32 %v209_v30, %v209_v30 }
  0x28   :  { %v472_v14 = vpop.eup %471  ;;  %v37_v24 = vmul.f32 %v470_v13, %v470_v13  ;;  %v223_v51 = vsub.f32 %v602_v4, %v639_v40  ;;  %v185_v54 = vmax.f32 %v184_v33, 1e-20  ;;  %v198_v55 = vadd.f32 %v197_v36, %v196_v34 }
  0x29   :  { %v474_v16 = vpop.eup %473  ;;  %v55_v27 = vmul.f32 %v472_v14, %v472_v14  ;;  %v236_v56 = vsub.f32 %v604_v5, %v611_v10  ;;  %485 = vrsqrt.f32 %v171_v43  ;;  %v224_v17 = vmul.f32 %v222_v50, %v222_v50 }
  0x2a   :  { %v659_v29 = vpop.eup %475  ;;  %v73_v32 = vmul.f32 %v474_v16, %v474_v16  ;;  %v38_v39 = vmul.f32 1e-06, %v37_v24  ;;  %v40_v41 = vmul.f32 %v470_v13, %v37_v24  ;;  %487 = vrsqrt.f32 %v185_v54 }
  0x2b   :  { %v478_v31 = vpop.eup %477  ;;  %v56_v42 = vmul.f32 1e-06, %v55_v27  ;;  %v58_v44 = vmul.f32 %v472_v14, %v55_v27  ;;  %v91_v45 = vmul.f32 %v659_v29, %v659_v29  ;;  %v199_v15 = vmax.f32 %v198_v55, 1e-20 }
  0x2c   :  { %v109_v46 = vmul.f32 %v478_v31, %v478_v31  ;;  %v74_v48 = vmul.f32 1e-06, %v73_v32  ;;  %v76_v49 = vmul.f32 %v474_v16, %v73_v32  ;;  %v39_v58 = vsub.f32 %v470_v13, %v38_v39 }
  0x2d   :  { %v663_v38 = vpop.eup %479  ;;  %v41_v59 = vmul.f32 1e-12, %v40_v41  ;;  %v57_v60 = vsub.f32 %v472_v14, %v56_v42  ;;  %v59_v2 = vmul.f32 1e-12, %v58_v44  ;;  %v679_v61 = vmul.f32 1e-06, %v91_v45 }
  0x2e   :  { %v127_v53 = vmul.f32 %v663_v38, %v663_v38  ;;  %v110_v4 = vmul.f32 1e-06, %v109_v46  ;;  %v112_v62 = vmul.f32 %v478_v31, %v109_v46  ;;  %v75_v63 = vsub.f32 %v474_v16, %v74_v48 }
  0x2f   :  { %v77_v0 = vmul.f32 1e-12, %v76_v49  ;;  %v94_v1 = vmul.f32 %v659_v29, %v91_v45  ;;  %v212_v13 = vadd.f32 %v211_v47, %v210_v37  ;;  %v689_v14 = vadd.f32 %v41_v59, %v39_v58 }
  0x30   :  { %v671_v52 = vpop.eup %481  ;;  %v684_v7 = vmul.f32 1e-06, %v127_v53  ;;  %v130_v8 = vmul.f32 %v663_v38, %v127_v53  ;;  %v691_v16 = vadd.f32 %v59_v2, %v57_v60  ;;  %v93_v21 = vsub.f32 %v659_v29, %v679_v61 }
  0x31   :  { %v677_v57 = vpop.eup %483  ;;  %v145_v3 = vmul.f32 %v671_v52, %v671_v52  ;;  %v111_v22 = vsub.f32 %v478_v31, %v110_v4  ;;  %v113_v23 = vmul.f32 1e-12, %v112_v62  ;;  %v695_v24 = vadd.f32 %v77_v0, %v75_v63 }
  0x32   :  { %v159_v9 = vmul.f32 %v677_v57, %v677_v57  ;;  %v95_v27 = vmul.f32 1e-12, %v94_v1  ;;  %v129_v32 = vsub.f32 %v663_v38, %v684_v7  ;;  %v131_v33 = vmul.f32 1e-12, %v130_v8 }
  0x33   :  { %v697_v28 = vmul.f32 1e-06, %v145_v3  ;;  %v148_v30 = vmul.f32 %v671_v52, %v145_v3  ;;  %v213_v36 = vmax.f32 %v212_v13, 1e-20  ;;  %v225_v39 = vmul.f32 %v223_v51, %v223_v51  ;;  %v711_v38 = vpop.eup %485 }
  0x34   :  { %v702_v34 = vmul.f32 1e-06, %v159_v9  ;;  %v162_v37 = vmul.f32 %v677_v57, %v159_v9  ;;  %v237_v29 = vsub.f32 %v606_v6, %v613_v11  ;;  %v238_v31 = vmul.f32 %v236_v56, %v236_v56 }
  0x35   :  { %v114_v41 = vadd.f32 %v113_v23, %v111_v22  ;;  %489 = vrsqrt.f32 %v199_v15  ;;  %v250_v42 = vsub.f32 %v604_v5, %v615_v12  ;;  %v251_v43 = vsub.f32 %v606_v6, %v622_v18 }
  0x36   :  { %491 = vrsqrt.f32 %v213_v36  ;;  %v226_v44 = vadd.f32 %v225_v39, %v224_v17  ;;  %v239_v45 = vmul.f32 %v237_v29, %v237_v29  ;;  %v264_v46 = vsub.f32 %v604_v5, %v624_v19 }
  0x37   :  { %v147_v47 = vsub.f32 %v671_v52, %v697_v28  ;;  %v252_v48 = vmul.f32 %v250_v42, %v250_v42  ;;  %v253_v49 = vmul.f32 %v251_v43, %v251_v43  ;;  %v265_v50 = vsub.f32 %v606_v6, %v626_v20  ;;  %v725_v52 = vpop.eup %487 }
  0x38   :  { %v227_v51 = vmax.f32 %v226_v44, 1e-20  ;;  %v240_v53 = vadd.f32 %v239_v45, %v238_v31  ;;  %v266_v54 = vmul.f32 %v264_v46, %v264_v46  ;;  %v278_v55 = vsub.f32 %v604_v5, %v629_v25 }
  0x39   :  { %v254_v56 = vadd.f32 %v253_v49, %v252_v48  ;;  %v267_v58 = vmul.f32 %v265_v50, %v265_v50  ;;  %v279_v59 = vsub.f32 %v606_v6, %v631_v26  ;;  %v292_v60 = vsub.f32 %v604_v5, %v635_v35 }
  0x3a   :  { %493 = vrsqrt.f32 %v227_v51  ;;  %v241_v2 = vmax.f32 %v240_v53, 1e-20  ;;  %v280_v61 = vmul.f32 %v278_v55, %v278_v55  ;;  %v293_v4 = vsub.f32 %v606_v6, %v639_v40 }
  0x3b   :  { %v255_v62 = vmax.f32 %v254_v56, 1e-20  ;;  %v268_v63 = vadd.f32 %v267_v58, %v266_v54  ;;  %v281_v0 = vmul.f32 %v279_v59, %v279_v59  ;;  %v294_v1 = vmul.f32 %v292_v60, %v292_v60 }
  0x3c   :  { %495 = vrsqrt.f32 %v241_v2  ;;  %v295_v3 = vmul.f32 %v293_v4, %v293_v4  ;;  %v306_v7 = vsub.f32 %v611_v10, %v615_v12  ;;  %v307_v5 = vsub.f32 %v613_v11, %v622_v18 }
  0x3d   :  { %v149_v8 = vmul.f32 1e-12, %v148_v30  ;;  %v173_v9 = vmul.f32 %v711_v38, %v711_v38  ;;  %v187_v13 = vmul.f32 %v725_v52, %v725_v52  ;;  %497 = vrsqrt.f32 %v255_v62 }
  0x3e   :  { %v737_v6 = vadd.f32 %v95_v27, %v93_v21  ;;  %v132_v15 = vadd.f32 %v131_v33, %v129_v32  ;;  %v161_v17 = vsub.f32 %v677_v57, %v702_v34  ;;  %v282_v22 = vadd.f32 %v281_v0, %v280_v61 }
  0x3f   :  { %v741_v23 = vpop.eup %489  ;;  %v744_v28 = vadd.f32 %v114_v41, %v689_v14  ;;  %v163_v30 = vmul.f32 1e-12, %v162_v37  ;;  %v269_v36 = vmax.f32 %v268_v63, 1e-20  ;;  %v296_v39 = vadd.f32 %v295_v3, %v294_v1 }
  0x40   :  { %v746_v29 = vpop.eup %491  ;;  %v308_v31 = vmul.f32 %v306_v7, %v306_v7  ;;  %v309_v42 = vmul.f32 %v307_v5, %v307_v5  ;;  %v320_v21 = vsub.f32 %v611_v10, %v624_v19  ;;  %v321_v27 = vsub.f32 %v613_v11, %v626_v20 }
  0x41   :  { %v150_v57 = vadd.f32 %v149_v8, %v147_v47  ;;  %v174_v32 = vmul.f32 1e-06, %v173_v9  ;;  %v176_v33 = vmul.f32 %v711_v38, %v173_v9  ;;  %v188_v34 = vmul.f32 1e-06, %v187_v13 }
  0x42   :  { %v754_v14 = vadd.f32 %v132_v15, %v691_v16  ;;  %v190_v37 = vmul.f32 %v725_v52, %v187_v13  ;;  %v201_v41 = vmul.f32 %v741_v23, %v741_v23  ;;  %v283_v43 = vmax.f32 %v282_v22, 1e-20 }
  0x43   :  { %v215_v44 = vmul.f32 %v746_v29, %v746_v29  ;;  %499 = vrsqrt.f32 %v269_v36  ;;  %v334_v45 = vsub.f32 %v611_v10, %v629_v25  ;;  %v335_v46 = vsub.f32 %v613_v11, %v631_v26 }
  0x44   :  { %v494_v47 = vpop.eup %493  ;;  %v297_v48 = vmax.f32 %v296_v39, 1e-20  ;;  %v310_v16 = vadd.f32 %v309_v42, %v308_v31  ;;  %v322_v49 = vmul.f32 %v320_v21, %v320_v21  ;;  %v323_v50 = vmul.f32 %v321_v27, %v321_v27 }
  0x45   :  { %v175_v51 = vsub.f32 %v711_v38, %v174_v32  ;;  %v177_v53 = vmul.f32 1e-12, %v176_v33  ;;  %v189_v54 = vsub.f32 %v725_v52, %v188_v34  ;;  %v229_v55 = vmul.f32 %v494_v47, %v494_v47 }
  0x46   :  { %v767_v56 = vpop.eup %495  ;;  %v191_v58 = vmul.f32 1e-12, %v190_v37  ;;  %501 = vrsqrt.f32 %v283_v43  ;;  %v336_v59 = vmul.f32 %v334_v45, %v334_v45  ;;  %v337_v60 = vmul.f32 %v335_v46, %v335_v46 }
  0x47   :  { %v769_v2 = vpop.eup %497  ;;  %v202_v61 = vmul.f32 1e-06, %v201_v41  ;;  %v204_v4 = vmul.f32 %v741_v23, %v201_v41  ;;  %v216_v62 = vmul.f32 1e-06, %v215_v44  ;;  %v218_v63 = vmul.f32 %v746_v29, %v215_v44 }
  0x48   :  { %503 = vrsqrt.f32 %v297_v48  ;;  %v311_v38 = vmax.f32 %v310_v16, 1e-20  ;;  %v324_v0 = vadd.f32 %v323_v50, %v322_v49  ;;  %v348_v52 = vsub.f32 %v611_v10, %v635_v35 }
  0x49   :  { %v230_v1 = vmul.f32 1e-06, %v229_v55  ;;  %v232_v3 = vmul.f32 %v494_v47, %v229_v55  ;;  %v243_v7 = vmul.f32 %v767_v56, %v767_v56  ;;  %v349_v5 = vsub.f32 %v613_v11, %v639_v40 }
  0x4a   :  { %v164_v8 = vadd.f32 %v163_v30, %v161_v17  ;;  %v178_v9 = vadd.f32 %v177_v53, %v175_v51  ;;  %v257_v13 = vmul.f32 %v769_v2, %v769_v2  ;;  %v338_v15 = vadd.f32 %v337_v60, %v336_v59 }
  0x4b   :  { %v192_v22 = vadd.f32 %v191_v58, %v189_v54  ;;  %v203_v36 = vsub.f32 %v741_v23, %v202_v61  ;;  %v205_v39 = vmul.f32 1e-12, %v204_v4  ;;  %v217_v10 = vsub.f32 %v746_v29, %v216_v62 }
  0x4c   :  { %v219_v31 = vmul.f32 1e-12, %v218_v63  ;;  %505 = vrsqrt.f32 %v311_v38  ;;  %v325_v42 = vmax.f32 %v324_v0, 1e-20  ;;  %v350_v21 = vmul.f32 %v348_v52, %v348_v52 }
  0x4d   :  { %v783_v27 = vpop.eup %499  ;;  %v231_v32 = vsub.f32 %v494_v47, %v230_v1  ;;  %v233_v11 = vmul.f32 1e-12, %v232_v3  ;;  %v244_v17 = vmul.f32 1e-06, %v243_v7  ;;  %v351_v30 = vmul.f32 %v349_v5, %v349_v5 }
  0x4e   :  { %v246_v33 = vmul.f32 %v767_v56, %v243_v7  ;;  %v258_v34 = vmul.f32 1e-06, %v257_v13  ;;  %v260_v37 = vmul.f32 %v769_v2, %v257_v13  ;;  %v339_v41 = vmax.f32 %v338_v15, 1e-20 }
  0x4f   :  { %v151_v23 = vadd.f32 %v150_v57, %v695_v24  ;;  %v165_v29 = vadd.f32 %v164_v8, %v737_v6  ;;  %v179_v43 = vadd.f32 %v178_v9, %v744_v28  ;;  %v206_v45 = vadd.f32 %v205_v39, %v203_v36 }
  0x50   :  { %v790_v44 = vpop.eup %501  ;;  %v220_v46 = vadd.f32 %v219_v31, %v217_v10  ;;  %v271_v47 = vmul.f32 %v783_v27, %v783_v27  ;;  %507 = vrsqrt.f32 %v325_v42  ;;  %v795_v48 = vadd.f32 %v192_v22, %v754_v14 }
  0x51   :  { %v234_v16 = vadd.f32 %v233_v11, %v231_v32  ;;  %v245_v49 = vsub.f32 %v767_v56, %v244_v17  ;;  %v352_v50 = vadd.f32 %v351_v30, %v350_v21  ;;  %v247_v6 = vmul.f32 1e-12, %v246_v33 }
  0x52   :  { %v798_v24 = vpop.eup %503  ;;  %v259_v28 = vsub.f32 %v769_v2, %v258_v34  ;;  %v261_v57 = vmul.f32 1e-12, %v260_v37  ;;  %509 = vrsqrt.f32 %v339_v41  ;;  %v285_v51 = vmul.f32 %v790_v44, %v790_v44 }
  0x53   :  { %v353_v53 = vmax.f32 %v352_v50, 1e-20  ;;  %v362_v54 = vsub.f32 %v615_v12, %v624_v19  ;;  %v363_v14 = vsub.f32 %v622_v18, %v626_v20  ;;  %v807_v55 = vadd.f32 %v206_v45, %v151_v23 }
  0x54   :  { %v809_v56 = vadd.f32 %v220_v46, %v165_v29  ;;  %v811_v58 = vmul.f32 1e-06, %v271_v47  ;;  %v376_v59 = vsub.f32 %v615_v12, %v629_v25  ;;  %v274_v60 = vmul.f32 %v783_v27, %v271_v47 }
  0x55   :  { %v299_v2 = vmul.f32 %v798_v24, %v798_v24  ;;  %511 = vrsqrt.f32 %v353_v53  ;;  %v364_v61 = vmul.f32 %v362_v54, %v362_v54  ;;  %v820_v62 = vadd.f32 %v234_v16, %v179_v43 }
  0x56   :  { %v818_v4 = vpop.eup %505  ;;  %v822_v63 = vadd.f32 %v247_v6, %v245_v49  ;;  %v365_v38 = vmul.f32 %v363_v14, %v363_v14  ;;  %v377_v0 = vsub.f32 %v622_v18, %v631_v26  ;;  %v826_v52 = vadd.f32 %v261_v57, %v259_v28 }
  0x57   :  { %v286_v1 = vmul.f32 1e-06, %v285_v51  ;;  %v378_v3 = vmul.f32 %v376_v59, %v376_v59  ;;  %v390_v7 = vsub.f32 %v615_v12, %v635_v35  ;;  %v273_v5 = vsub.f32 %v783_v27, %v811_v58 }
  0x58   :  { %v366_v8 = vadd.f32 %v365_v38, %v364_v61  ;;  %v379_v9 = vmul.f32 %v377_v0, %v377_v0  ;;  %v391_v13 = vsub.f32 %v622_v18, %v639_v40  ;;  %v275_v15 = vmul.f32 1e-12, %v274_v60 }
  0x59   :  { %v288_v22 = vmul.f32 %v790_v44, %v285_v51  ;;  %v835_v36 = vmul.f32 1e-06, %v299_v2  ;;  %v392_v39 = vmul.f32 %v390_v7, %v390_v7  ;;  %v404_v12 = vsub.f32 %v624_v19, %v629_v25 }
  0x5a   :  { %v837_v10 = vpop.eup %507  ;;  %v367_v31 = vmax.f32 %v366_v8, 1e-20  ;;  %v380_v42 = vadd.f32 %v379_v9, %v378_v3  ;;  %v393_v21 = vmul.f32 %v391_v13, %v391_v13  ;;  %v287_v27 = vsub.f32 %v790_v44, %v286_v1 }
  0x5b   :  { %v302_v32 = vmul.f32 %v798_v24, %v299_v2  ;;  %v313_v18 = vmul.f32 %v818_v4, %v818_v4  ;;  %v405_v11 = vsub.f32 %v626_v20, %v631_v26  ;;  %v406_v34 = vmul.f32 %v404_v12, %v404_v12 }
  0x5c   :  { %v847_v17 = vpop.eup %509  ;;  %513 = vrsqrt.f32 %v367_v31  ;;  %v381_v30 = vmax.f32 %v380_v42, 1e-20  ;;  %v394_v33 = vadd.f32 %v393_v21, %v392_v39  ;;  %v289_v37 = vmul.f32 1e-12, %v288_v22 }
  0x5d   :  { %v301_v41 = vsub.f32 %v798_v24, %v835_v36  ;;  %v327_v23 = vmul.f32 %v837_v10, %v837_v10  ;;  %v407_v29 = vmul.f32 %v405_v11, %v405_v11  ;;  %v418_v44 = vsub.f32 %v624_v19, %v635_v35 }
  0x5e   :  { %515 = vrsqrt.f32 %v381_v30  ;;  %v395_v43 = vmax.f32 %v394_v33, 1e-20  ;;  %v419_v45 = vsub.f32 %v626_v20, %v639_v40  ;;  %v341_v47 = vmul.f32 %v847_v17, %v847_v17 }
  0x5f   :  { %v512_v46 = vpop.eup %511  ;;  %v408_v16 = vadd.f32 %v407_v29, %v406_v34  ;;  %v432_v49 = vsub.f32 %v629_v25, %v635_v35  ;;  %v433_v50 = vsub.f32 %v631_v26, %v639_v40  ;;  %v420_v6 = vmul.f32 %v418_v44, %v418_v44 }
  0x60   :  { %v355_v24 = vmul.f32 %v512_v46, %v512_v46  ;;  %517 = vrsqrt.f32 %v395_v43  ;;  %v421_v28 = vmul.f32 %v419_v45, %v419_v45  ;;  %v314_v57 = vmul.f32 1e-06, %v313_v18 }
  0x61   :  { %v409_v19 = vmax.f32 %v408_v16, 1e-20  ;;  %v434_v51 = vmul.f32 %v432_v49, %v432_v49  ;;  %v435_v53 = vmul.f32 %v433_v50, %v433_v50  ;;  %v316_v20 = vmul.f32 %v818_v4, %v313_v18 }
  0x62   :  { %v328_v54 = vmul.f32 1e-06, %v327_v23  ;;  %v330_v14 = vmul.f32 %v837_v10, %v327_v23  ;;  %v422_v58 = vadd.f32 %v421_v28, %v420_v6  ;;  %v342_v59 = vmul.f32 1e-06, %v341_v47 }
  0x63   :  { %v344_v25 = vmul.f32 %v847_v17, %v341_v47  ;;  %519 = vrsqrt.f32 %v409_v19  ;;  %v436_v35 = vadd.f32 %v435_v53, %v434_v51  ;;  %v303_v26 = vmul.f32 1e-12, %v302_v32 }
  0x64   :  { %v356_v40 = vmul.f32 1e-06, %v355_v24  ;;  %v358_v60 = vmul.f32 %v512_v46, %v355_v24  ;;  %v423_v2 = vmax.f32 %v422_v58, 1e-20  ;;  %v276_v61 = vadd.f32 %v275_v15, %v273_v5 }
  0x65   :  { %v290_v38 = vadd.f32 %v289_v37, %v287_v27  ;;  %v315_v0 = vsub.f32 %v818_v4, %v314_v57  ;;  %v437_v1 = vmax.f32 %v436_v35, 1e-20  ;;  %v317_v7 = vmul.f32 1e-12, %v316_v20 }
  0x66   :  { %v514_v3 = vpop.eup %513  ;;  %v329_v8 = vsub.f32 %v837_v10, %v328_v54  ;;  %v331_v9 = vmul.f32 1e-12, %v330_v14  ;;  %521 = vrsqrt.f32 %v423_v2  ;;  %v343_v13 = vsub.f32 %v847_v17, %v342_v59 }
  0x67   :  { %v345_v22 = vmul.f32 1e-12, %v344_v25  ;;  %v369_v36 = vmul.f32 %v514_v3, %v514_v3  ;;  %523 = vrsqrt.f32 %v437_v1  ;;  %v249_v31 = vadd.f32 %v822_v63, %v795_v48 }
  0x68   :  { %v516_v39 = vpop.eup %515  ;;  %v304_v5 = vadd.f32 %v303_v26, %v301_v41  ;;  %v357_v15 = vsub.f32 %v512_v46, %v356_v40  ;;  %v359_v42 = vmul.f32 1e-12, %v358_v60  ;;  %v263_v10 = vadd.f32 %v826_v52, %v807_v55 }
  0x69   :  { %v370_v4 = vmul.f32 1e-06, %v369_v36  ;;  %v372_v21 = vmul.f32 %v514_v3, %v369_v36  ;;  %v383_v12 = vmul.f32 %v516_v39, %v516_v39  ;;  %v277_v32 = vadd.f32 %v276_v61, %v809_v56 }
  0x6a   :  { %v518_v27 = vpop.eup %517  ;;  %v291_v18 = vadd.f32 %v290_v38, %v820_v62  ;;  %v318_v11 = vadd.f32 %v317_v7, %v315_v0  ;;  %v332_v17 = vadd.f32 %v331_v9, %v329_v8  ;;  %v346_v30 = vadd.f32 %v345_v22, %v343_v13 }
  0x6b   :  { %v384_v33 = vmul.f32 1e-06, %v383_v12  ;;  %v386_v34 = vmul.f32 %v516_v39, %v383_v12  ;;  %v305_v48 = vadd.f32 %v304_v5, %v249_v31  ;;  %v360_v63 = vadd.f32 %v359_v42, %v357_v15 }
  0x6c   :  { %v397_v37 = vmul.f32 %v518_v27, %v518_v27  ;;  %v371_v23 = vsub.f32 %v514_v3, %v370_v4  ;;  %v373_v29 = vmul.f32 1e-12, %v372_v21  ;;  %v319_v52 = vadd.f32 %v318_v11, %v263_v10 }
  0x6d   :  { %v520_v41 = vpop.eup %519  ;;  %v385_v43 = vsub.f32 %v516_v39, %v384_v33  ;;  %v387_v44 = vmul.f32 1e-12, %v386_v34  ;;  %v333_v56 = vadd.f32 %v332_v17, %v277_v32  ;;  %v347_v47 = vadd.f32 %v346_v30, %v291_v18 }
  0x6e   :  { %v398_v45 = vmul.f32 1e-06, %v397_v37  ;;  %v400_v46 = vmul.f32 %v518_v27, %v397_v37  ;;  %v411_v55 = vmul.f32 %v520_v41, %v520_v41  ;;  %v361_v28 = vadd.f32 %v360_v63, %v305_v48 }
  0x6f   :  { %v374_v57 = vadd.f32 %v373_v29, %v371_v23  ;;  %v388_v19 = vadd.f32 %v387_v44, %v385_v43 }
  0x70   :  { %v522_v62 = vpop.eup %521  ;;  %v399_v16 = vsub.f32 %v518_v27, %v398_v45  ;;  %v401_v49 = vmul.f32 1e-12, %v400_v46  ;;  %v412_v50 = vmul.f32 1e-06, %v411_v55  ;;  %v414_v24 = vmul.f32 %v520_v41, %v411_v55 }
  0x71   :  { %v524_v6 = vpop.eup %523  ;;  %v425_v51 = vmul.f32 %v522_v62, %v522_v62  ;;  %v375_v60 = vadd.f32 %v374_v57, %v319_v52  ;;  %v389_v38 = vadd.f32 %v388_v19, %v333_v56 }
  0x72   :  { %v402_v53 = vadd.f32 %v401_v49, %v399_v16  ;;  %v413_v20 = vsub.f32 %v520_v41, %v412_v50  ;;  %v415_v54 = vmul.f32 1e-12, %v414_v24  ;;  %v439_v14 = vmul.f32 %v524_v6, %v524_v6 }
  0x73   :  { %v426_v58 = vmul.f32 1e-06, %v425_v51  ;;  %v428_v59 = vmul.f32 %v522_v62, %v425_v51 }
  0x74   :  { %v403_v25 = vadd.f32 %v402_v53, %v347_v47  ;;  %v416_v35 = vadd.f32 %v415_v54, %v413_v20  ;;  %v440_v26 = vmul.f32 1e-06, %v439_v14  ;;  %v442_v40 = vmul.f32 %v524_v6, %v439_v14 }
  0x75   :  { %v427_v2 = vsub.f32 %v522_v62, %v426_v58  ;;  %v429_v61 = vmul.f32 1e-12, %v428_v59 }
  0x76   :  { %v417_v0 = vadd.f32 %v416_v35, %v361_v28  ;;  %v441_v1 = vsub.f32 %v524_v6, %v440_v26  ;;  %v443_v3 = vmul.f32 1e-12, %v442_v40 }
  0x77   :  { %v430_v7 = vadd.f32 %v429_v61, %v427_v2 }
  0x78   :  { %v444_v8 = vadd.f32 %v443_v3, %v441_v1  ;;  %v446_v9 = vadd.f32 %v417_v0, %v403_v25 }
  0x79   :  { %v431_v13 = vadd.f32 %v430_v7, %v375_v60 }
  0x7a   :  { %v445_v22 = vadd.f32 %v444_v8, %v389_v38 }
  0x7b   :  { %v447_v36 = vadd.f32 %v446_v9, %v431_v13 }
  0x7d   :  { %v448_v39 = vadd.f32 %v447_v36, %v445_v22 }
  0x7f   :  { %449 = vst [vmem:[#allocation5] sm:$0x1] %v448_v39 }
  0x80   :  { %558 = shalt.err (!%p555_p12)
}
  0x81   :  { %s559_s25 = scalar_lea.hbm %s888_s1, 16 }
  0x82   :  { %p560_p13 = scmp.ne.s32.totalorder %s888_s1, %s559_s25  ;;  %p563_p0 = scmp.lt.u32.totalorder %s559_s25, %s888_s1 }
  0x84   :  { %p565_p1 = pnand %p563_p0, %p560_p13 }
  0x86   :  { %568 = shalt.err (!%p565_p1)
}
  0x87   :  { %459 = dma.vmem_to_hbm [thread:$0]  %s457_s20, 16, %s888_s1, [#allocation4]  }
  0x88   :  { %571 = dma.done.wait [#allocation4], 16  }
  0x89   :  { %572 = vsyncadd [#allocation4], 4294967280 }
  0x8a   :  { %463 = vsyncpa [#allocation3], 1 }
  0x8b   :  { %464 = vsyncpa [#allocation4], 1 }

</bundles_post_ra>
